<compile_context>
chip_gen: v6e
topology: v6e:2x2x1
jax: 0.10.0
libtpu: 0.0.40
codegen_flags: <defaults>
</compile_context>

<pallas_src>
import math

import jax
import jax.numpy as jnp
from jax.experimental import pallas as pl
from jax.experimental.pallas import tpu as pltpu

_INV_SQRT2 = 1.0 / math.sqrt(2.0)


def _gelu(x, approximate=False):
    if approximate:
        # tanh approximation rides the EUP slot (frees VALU); not bit-identical to
        # torch's default erf GELU, so it is opt-in.
        return 0.5 * x * (1.0 + jnp.tanh(0.7978845608028654 * (x + 0.044715 * x * x * x)))
    # torch.nn.functional.gelu default (erf-based).
    return 0.5 * x * (1.0 + jax.lax.erf(x * _INV_SQRT2))


# ----------------------------------------------------------------------------- kernel
def _make_fused_mlp_kernel(layer_cfg, n_gmaps, l_valid, eps, io_dtype, gelu_approx):
    """layer_cfg: per layer (activate: bool, group_size: int, gmap_index: int)."""
    n_layers = len(layer_cfg)

    def kernel(*refs):
        x_ref = refs[0]
        o_ref = refs[-1]
        gmap_refs = refs[1 + 2 * n_layers: 1 + 2 * n_layers + n_gmaps]
        TB, L_pad, _ = x_ref.shape

        # Mask for L rows the wrapper padded (only materialized when L % 8 != 0).
        lmask = None
        if l_valid != L_pad:
            lmask = (jax.lax.broadcasted_iota(jnp.int32, (L_pad, 1), 0)
                     < l_valid).astype(jnp.float32)

        h = x_ref[...]                                        # io_dtype, (TB, L_pad, Cin)
        for li, (activate, gs, gi) in enumerate(layer_cfg):
            w_ref = refs[1 + 2 * li]                          # (Cin, Cout_pad) io_dtype
            p_ref = refs[2 + 2 * li]                          # (3, Cout_pad) f32: b, gamma, beta
            cin, cout = w_ref.shape

            # Conv1d(kernel_size=1) == matmul over the channel (lane) dim. The wrapper
            # guarantees L_pad % 8 == 0, so merging TB into the sublane axis is a pure
            # view (no relayout copy). Operands are already in io_dtype (bf16/f32);
            # accumulation is f32.
            x2 = h.reshape(TB * L_pad, cin)
            y = jnp.dot(x2, w_ref[...], preferred_element_type=jnp.float32)
            y = (y + p_ref[0:1, :]).reshape(TB, L_pad, cout)  # f32

            if activate:
                gamma = p_ref[1:2, :]
                beta = p_ref[2:3, :]
                gmap = gmap_refs[gi][...]                     # (Cout_pad, Cout_pad) f32
                inv_n = 1.0 / float(l_valid * gs)
                # Two-pass (centered) GroupNorm in f32; per-group broadcast rides the
                # MXU via the resident same-group indicator matrix.
                ys = y if lmask is None else y * lmask
                mean = jnp.dot(jnp.sum(ys, axis=1), gmap,
                               preferred_element_type=jnp.float32) * inv_n
                yc = y - mean[:, None, :]
                ycs = yc if lmask is None else yc * lmask
                var = jnp.dot(jnp.sum(ycs * ycs, axis=1), gmap,
                              preferred_element_type=jnp.float32) * inv_n
                # All-zero padded channel groups give var == 0 -> rsqrt(eps) * 0 == 0
                # exactly; eps keeps this finite, do not "optimize" it away.
                inv_std = jax.lax.rsqrt(var + eps)
                act = _gelu(yc * inv_std[:, None, :] * gamma + beta, gelu_approx)
                # Carry the activation narrow between layers; keep f32 for the store.
                h = act.astype(io_dtype) if li < n_layers - 1 else act
            else:
                h = y

        # TODO(synk): for very large L, add an "arbitrary" grid axis over L with VMEM
        # scratch sum/sumsq accumulators (two-pass GroupNorm) instead of requiring
        # full-L residency per sample.
        o_ref[...] = h.astype(o_ref.dtype)

    return kernel


# ---------------------------------------------------------------------------- helpers
def _round_up(v, m):
    return -(-v // m) * m


def _tpu_budget():
    """(vmem_limit_bytes, two_tensorcores) for the attached TPU generation."""
    vmem_total = None
    try:
        vmem_total = int(pltpu.get_tpu_info().vmem_capacity_bytes)
    except Exception:
        pass
    kind = ""
    try:
        kind = jax.devices()[0].device_kind.lower()
    except Exception:
        pass
    two_tc = ("v7" in kind) or ("7x" in kind)
    if vmem_total is None:
        vmem_total = (64 << 20) if two_tc else (128 << 20)
    # ~112 MiB usable on 128-MiB parts (v5e/v6e), ~54 MiB on v7x's 64 MiB per TC.
    return min(int(vmem_total * 0.85), 112 << 20), two_tc


def _choose_block_b(B, per_sample_bytes, act_budget, two_tc):
    """Largest batch tile TB that fits the activation VMEM budget.

    On two-TensorCore parts (v7x) the number of grid steps is kept even (padding the
    batch if needed) so the 'parallel' axis splits evenly across both cores.
    """
    cap = max(1, min(B, int(act_budget // max(per_sample_bytes, 1))))

    def padded(tb):
        return _round_up(B, tb)

    # Largest divisor of B that fits the budget (no batch padding) ...
    tb = max([d for d in range(1, cap + 1) if B % d == 0] or [1])
    # ... unless B's divisors waste most of the achievable tile (e.g. prime B):
    # pad the batch instead so TB*L (the MXU M dim) stays large.
    if cap >= 2 * tb:
        tb = cap
    if two_tc and B >= 2:
        best = None
        for cand in range(min(cap, B), 0, -1):
            bp = padded(cand)
            if (bp // cand) % 2:
                continue
            key = (bp, -cand)                 # least padded work, then largest tile
            if best is None or key < best[0]:
                best = (key, cand)
        if best is not None:
            tb = best[1]
    return tb, padded(tb)


# ---------------------------------------------------------------------------- wrapper
def mlp_forward(x, params, num_layers, last_activate=False, num_groups=32,
                eps=1e-5, matmul_dtype=jnp.bfloat16, block_b=None,
                return_padded=False, gelu_approx=False):
    """x: (B, L, input_dim) — the module's input before its internal permute.

    matmul_dtype: MXU-operand / inter-layer-carry dtype (f32 accumulate). Default
    bf16 (MXU-native, halves weight+activation DMA); pass None for exact f32 parity.
    """
    assert len(params) == num_layers
    B, L, in_dim = x.shape
    out_dim = params[-1][0].shape[1]
    out_dtype = x.dtype
    io_dtype = jnp.dtype(jnp.float32 if matmul_dtype is None else matmul_dtype)

    # ---- pack / pad parameters (channel dims -> lane-dense multiples of 128) ------
    operands = []          # [w0, p0, w1, p1, ...] then gmaps appended below
    layer_cfg = []
    gmaps, gmap_index = [], {}
    cur_cin = in_dim       # input channels are NOT padded (saves a wrapper HBM pass)
    max_cpad = in_dim
    for i, (w, b, gamma, beta) in enumerate(params):
        activate = (i < num_layers - 1) or last_activate
        cout = w.shape[1]
        if activate:
            assert cout % num_groups == 0, "GroupNorm needs channels % num_groups == 0"
        cout_pad = _round_up(cout, 128)
        max_cpad = max(max_cpad, cout_pad)
        # Rows beyond the real input channels only ever multiply exactly-zero padded
        # activations; columns beyond the real output channels stay exactly zero.
        w_p = jnp.zeros((cur_cin, cout_pad), io_dtype)
        w_p = w_p.at[:w.shape[0], :cout].set(w.astype(io_dtype))
        p_p = jnp.zeros((3, cout_pad), jnp.float32)
        p_p = p_p.at[0, :cout].set(b.astype(jnp.float32))
        p_p = p_p.at[1, :cout].set(gamma.astype(jnp.float32))
        p_p = p_p.at[2, :cout].set(beta.astype(jnp.float32))
        operands += [w_p, p_p]
        gs, gi = 1, -1
        if activate:
            gs = cout // num_groups
            key_ = (cout_pad, gs)
            if key_ not in gmap_index:
                gmap_index[key_] = len(gmaps)
                grp = jnp.arange(cout_pad, dtype=jnp.int32) // gs
                gmaps.append((grp[:, None] == grp[None, :]).astype(jnp.float32))
            gi = gmap_index[key_]
        layer_cfg.append((activate, gs, gi))
        cur_cin = cout_pad
    cout_pad_last = cur_cin

    # ---- activations: pad L to a multiple of 8 so the in-kernel (TB,L,C)->(TB*L,C)
    #      merge is relayout-free (GroupNorm masks the padded rows) ------------------
    L_pad = _round_up(L, 8)
    x_in = x.astype(io_dtype)
    if L_pad != L:
        x_in = jnp.pad(x_in, ((0, 0), (0, L_pad - L), (0, 0)))

    # ---- generation-aware tile selection -------------------------------------------
    vmem_limit, two_tc = _tpu_budget()
    resident_bytes = (sum(int(o.size) * o.dtype.itemsize for o in operands)
                      + sum(int(g.size) * g.dtype.itemsize for g in gmaps))
    per_sample = (2 * L_pad * (in_dim * io_dtype.itemsize
                               + cout_pad_last * jnp.dtype(out_dtype).itemsize)
                  + 6 * L_pad * max_cpad * 4)        # ~one layer's live temporaries
    act_budget = max(vmem_limit - resident_bytes - (4 << 20), per_sample)
    if block_b is not None:
        TB, B_pad = int(block_b), _round_up(B, int(block_b))
    else:
        TB, B_pad = _choose_block_b(B, per_sample, act_budget, two_tc)
    if B_pad != B:
        x_in = jnp.pad(x_in, ((0, B_pad - B), (0, 0), (0, 0)))

    operands = [x_in] + operands + gmaps

    def _specs(single_buffer_resident):
        def resident(shape):
            nd = len(shape)
            idx = lambda i: (0,) * nd
            if single_buffer_resident:
                return pl.BlockSpec(shape, idx, pipeline_mode=pl.Buffered(1))
            return pl.BlockSpec(shape, idx)
        specs = [pl.BlockSpec((TB, L_pad, in_dim), lambda i: (i, 0, 0))]
        for li in range(num_layers):
            specs.append(resident(operands[1 + 2 * li].shape))   # weights
            specs.append(resident(operands[2 + 2 * li].shape))   # bias / gamma / beta
        for g in gmaps:
            specs.append(resident(g.shape))                      # same-group maps
        return specs

    out_spec = pl.BlockSpec((TB, L_pad, cout_pad_last), lambda i: (i, 0, 0))
    kernel = _make_fused_mlp_kernel(tuple(layer_cfg), len(gmaps), L, eps,
                                    io_dtype, gelu_approx)

    def _run(single_buffer_resident):
        return pl.pallas_call(
            kernel,
            out_shape=jax.ShapeDtypeStruct((B_pad, L_pad, cout_pad_last), out_dtype),
            grid=(B_pad // TB,),
            in_specs=_specs(single_buffer_resident),
            out_specs=out_spec,
            compiler_params=pltpu.CompilerParams(
                dimension_semantics=("parallel",),
                vmem_limit_bytes=int(vmem_limit)),
        )(*operands)

    try:
        # Residents (weights / params / group maps) have constant index_maps; a
        # single buffer halves their VMEM footprint (matters on v7x's 64 MiB).
        out = _run(True)
    except Exception:
        # pipeline_mode / Buffered(1) unsupported on this JAX build: fall back to
        # default double-buffered residents (correctness identical).
        out = _run(False)

    if B_pad != B or L_pad != L:
        out = out[:B, :L, :]
    if return_padded:
        return out               # lane-dense padded channel slab for fused consumers
    return out[:, :, :out_dim]


# ------------------------------------------------------------------- params / reference
def init_mlp_params(key, input_dim, hidden_dim, output_dim, num_layers):
    """Deterministic init mimicking Conv1d default (uniform +-1/sqrt(fan_in))."""
    h = [hidden_dim] * (num_layers - 1)
    dims_in = [input_dim] + h
    dims_out = h + [output_dim]
    params = []
    for n, k in zip(dims_in, dims_out):
        key, kw, kb = jax.random.split(key, 3)
        bound = 1.0 / math.sqrt(n)
        w = jax.random.uniform(kw, (n, k), jnp.float32, -bound, bound)   # (Cin, Cout)
        b = jax.random.uniform(kb, (k,), jnp.float32, -bound, bound)
        gamma = jnp.ones((k,), jnp.float32)
        beta = jnp.zeros((k,), jnp.float32)
        params.append((w, b, gamma, beta))
    return params


def _reference_forward(x, params, num_layers, last_activate=False, num_groups=32,
                       eps=1e-5, matmul_dtype=None):
    """Pure-JAX reference mirroring the PyTorch module's semantics."""
    for i, (w, b, gamma, beta) in enumerate(params):
        if matmul_dtype is not None:
            y = jnp.einsum("blc,ck->blk", x.astype(matmul_dtype), w.astype(matmul_dtype),
                           preferred_element_type=jnp.float32) + b
        else:
            y = jnp.einsum("blc,ck->blk", x, w) + b
        if i < num_layers - 1 or last_activate:
            B, L, C = y.shape
            gs = C // num_groups
            yg = y.transpose(0, 2, 1).reshape(B, num_groups, gs * L)
            mean = yg.mean(axis=-1, keepdims=True)
            var = ((yg - mean) ** 2).mean(axis=-1, keepdims=True)
            yn = (yg - mean) / jnp.sqrt(var + eps)
            yn = yn.reshape(B, C, L).transpose(0, 2, 1)
            y = _gelu(yn * gamma + beta)
        x = y
    return x


if __name__ == "__main__":
    # module config: MLP(input_dim=64, hidden_dim=64, output_dim=32, num_layers=3)
    input_dim, hidden_dim, output_dim, num_layers = 64, 64, 32, 3
    B, L = 2, 8

    key = jax.random.PRNGKey(0)
    key, kx, kp = jax.random.split(key, 3)
    x = jax.random.normal(kx, (B, L, input_dim), jnp.float32)
    params = init_mlp_params(kp, input_dim, hidden_dim, output_dim, num_layers)

    # Exact-f32 parity path (matches PyTorch semantics at 1e-4).
    out_f32 = jax.block_until_ready(
        mlp_forward(x, params, num_layers, last_activate=False, matmul_dtype=None))
    ref_f32 = _reference_forward(x, params, num_layers, last_activate=False)
    assert out_f32.shape == (B, L, output_dim)
    assert jnp.allclose(out_f32, ref_f32, rtol=1e-4, atol=1e-4)

    # Default fast path: bf16 MXU operands / bf16 inter-layer carry, f32 accumulate
    # and f32 GroupNorm / GELU math.
    out_bf16 = jax.block_until_ready(
        mlp_forward(x, params, num_layers, last_activate=False))
    ref_bf16 = _reference_forward(x, params, num_layers, last_activate=False,
                                  matmul_dtype=jnp.bfloat16)
    assert out_bf16.shape == (B, L, output_dim)
    assert jnp.allclose(out_bf16, ref_bf16, rtol=2e-2, atol=2e-2)

    print("KERNEL_OK")
</pallas_src>

<mosaic_0001>
module attributes {stable_mosaic.version = 11 : i64} {
  func.func @kernel(%arg0: i32, %arg1: memref<2x8x64xf32, #tpu.memory_space<vmem>>, %arg2: memref<64x128xf32, #tpu.memory_space<vmem>>, %arg3: memref<3x128xf32, #tpu.memory_space<vmem>>, %arg4: memref<128x128xf32, #tpu.memory_space<vmem>>, %arg5: memref<3x128xf32, #tpu.memory_space<vmem>>, %arg6: memref<128x128xf32, #tpu.memory_space<vmem>>, %arg7: memref<3x128xf32, #tpu.memory_space<vmem>>, %arg8: memref<128x128xf32, #tpu.memory_space<vmem>>, %arg9: memref<2x8x128xf32, #tpu.memory_space<vmem>>) attributes {dimension_semantics = [#tpu.dimension_semantics<parallel>], iteration_bounds = array<i64: 1>, scalar_prefetch = 0 : i64, scratch_operands = 0 : i64, tpu.core_type = #tpu.core_type<tc>, window_params = [{transform_indices = @transform_0, window_bounds = array<i64: 2, 8, 64>}, {pipeline_mode = #tpu.pipeline_mode<synchronous>, transform_indices = @transform_1, window_bounds = array<i64: 64, 128>}, {pipeline_mode = #tpu.pipeline_mode<synchronous>, transform_indices = @transform_2, window_bounds = array<i64: 3, 128>}, {pipeline_mode = #tpu.pipeline_mode<synchronous>, transform_indices = @transform_3, window_bounds = array<i64: 128, 128>}, {pipeline_mode = #tpu.pipeline_mode<synchronous>, transform_indices = @transform_4, window_bounds = array<i64: 3, 128>}, {pipeline_mode = #tpu.pipeline_mode<synchronous>, transform_indices = @transform_5, window_bounds = array<i64: 128, 128>}, {pipeline_mode = #tpu.pipeline_mode<synchronous>, transform_indices = @transform_6, window_bounds = array<i64: 3, 128>}, {pipeline_mode = #tpu.pipeline_mode<synchronous>, transform_indices = @transform_7, window_bounds = array<i64: 128, 128>}, {transform_indices = @transform_8, window_bounds = array<i64: 2, 8, 128>}]} {
    %c0 = arith.constant 0 : index
    %c0_0 = arith.constant 0 : index
    %c0_1 = arith.constant 0 : index
    %0 = vector.load %arg1[%c0, %c0_0, %c0_1] : memref<2x8x64xf32, #tpu.memory_space<vmem>>, vector<2x8x64xf32>
    %1 = vector.shape_cast %0 : vector<2x8x64xf32> to vector<16x64xf32>
    %c0_2 = arith.constant 0 : index
    %c0_3 = arith.constant 0 : index
    %2 = vector.load %arg2[%c0_2, %c0_3] : memref<64x128xf32, #tpu.memory_space<vmem>>, vector<64x128xf32>
    %cst = arith.constant dense<0.000000e+00> : vector<16x128xf32>
    %3 = tpu.matmul %1, %2, %cst {dimension_numbers = #tpu.dot_dimension_numbers<[1], [0], [0], [1], [0, 0, 1, 1], [], []>} : vector<16x64xf32>, vector<64x128xf32>, vector<16x128xf32> -> vector<16x128xf32>
    %c0_4 = arith.constant 0 : index
    %c0_5 = arith.constant 0 : index
    %4 = vector.load %arg3[%c0_4, %c0_5] : memref<3x128xf32, #tpu.memory_space<vmem>>, vector<1x128xf32>
    %5 = vector.broadcast %4 : vector<1x128xf32> to vector<16x128xf32>
    %6 = arith.addf %3, %5 : vector<16x128xf32>
    %7 = vector.shape_cast %6 : vector<16x128xf32> to vector<2x8x128xf32>
    %c1 = arith.constant 1 : index
    %c0_6 = arith.constant 0 : index
    %8 = vector.load %arg3[%c1, %c0_6] : memref<3x128xf32, #tpu.memory_space<vmem>>, vector<1x128xf32>
    %c2 = arith.constant 2 : index
    %c0_7 = arith.constant 0 : index
    %9 = vector.load %arg3[%c2, %c0_7] : memref<3x128xf32, #tpu.memory_space<vmem>>, vector<1x128xf32>
    %c0_8 = arith.constant 0 : index
    %c0_9 = arith.constant 0 : index
    %10 = vector.load %arg8[%c0_8, %c0_9] : memref<128x128xf32, #tpu.memory_space<vmem>>, vector<128x128xf32>
    %cst_10 = arith.constant dense<0.000000e+00> : vector<2x128xf32>
    %11 = vector.multi_reduction <add>, %7, %cst_10 [1] : vector<2x8x128xf32> to vector<2x128xf32>
    %cst_11 = arith.constant dense<0.000000e+00> : vector<2x128xf32>
    %12 = tpu.matmul %11, %10, %cst_11 {dimension_numbers = #tpu.dot_dimension_numbers<[1], [0], [0], [1], [0, 0, 1, 1], [], []>} : vector<2x128xf32>, vector<128x128xf32>, vector<2x128xf32> -> vector<2x128xf32>
    %cst_12 = arith.constant 6.250000e-02 : f32
    %13 = vector.broadcast %cst_12 : f32 to vector<2x128xf32>
    %14 = arith.mulf %12, %13 : vector<2x128xf32>
    %15 = vector.shape_cast %14 : vector<2x128xf32> to vector<2x1x128xf32>
    %16 = vector.broadcast %15 : vector<2x1x128xf32> to vector<2x8x128xf32>
    %17 = arith.subf %7, %16 : vector<2x8x128xf32>
    %18 = arith.mulf %17, %17 : vector<2x8x128xf32>
    %cst_13 = arith.constant dense<0.000000e+00> : vector<2x128xf32>
    %19 = vector.multi_reduction <add>, %18, %cst_13 [1] : vector<2x8x128xf32> to vector<2x128xf32>
    %cst_14 = arith.constant dense<0.000000e+00> : vector<2x128xf32>
    %20 = tpu.matmul %19, %10, %cst_14 {dimension_numbers = #tpu.dot_dimension_numbers<[1], [0], [0], [1], [0, 0, 1, 1], [], []>} : vector<2x128xf32>, vector<128x128xf32>, vector<2x128xf32> -> vector<2x128xf32>
    %cst_15 = arith.constant 6.250000e-02 : f32
    %21 = vector.broadcast %cst_15 : f32 to vector<2x128xf32>
    %22 = arith.mulf %20, %21 : vector<2x128xf32>
    %cst_16 = arith.constant 9.99999974E-6 : f32
    %23 = vector.broadcast %cst_16 : f32 to vector<2x128xf32>
    %24 = arith.addf %22, %23 : vector<2x128xf32>
    %25 = math.rsqrt %24 : vector<2x128xf32>
    %26 = vector.shape_cast %25 : vector<2x128xf32> to vector<2x1x128xf32>
    %27 = vector.broadcast %26 : vector<2x1x128xf32> to vector<2x8x128xf32>
    %28 = arith.mulf %17, %27 : vector<2x8x128xf32>
    %29 = vector.shape_cast %8 : vector<1x128xf32> to vector<1x1x128xf32>
    %30 = vector.broadcast %29 : vector<1x1x128xf32> to vector<2x8x128xf32>
    %31 = arith.mulf %28, %30 : vector<2x8x128xf32>
    %32 = vector.shape_cast %9 : vector<1x128xf32> to vector<1x1x128xf32>
    %33 = vector.broadcast %32 : vector<1x1x128xf32> to vector<2x8x128xf32>
    %34 = arith.addf %31, %33 : vector<2x8x128xf32>
    %cst_17 = arith.constant 5.000000e-01 : f32
    %35 = vector.broadcast %cst_17 : f32 to vector<2x8x128xf32>
    %36 = arith.mulf %35, %34 : vector<2x8x128xf32>
    %cst_18 = arith.constant 0.707106769 : f32
    %37 = vector.broadcast %cst_18 : f32 to vector<2x8x128xf32>
    %38 = arith.mulf %34, %37 : vector<2x8x128xf32>
    %39 = math.erf %38 : vector<2x8x128xf32>
    %cst_19 = arith.constant 1.000000e+00 : f32
    %40 = vector.broadcast %cst_19 : f32 to vector<2x8x128xf32>
    %41 = arith.addf %40, %39 : vector<2x8x128xf32>
    %42 = arith.mulf %36, %41 : vector<2x8x128xf32>
    %43 = vector.shape_cast %42 : vector<2x8x128xf32> to vector<16x128xf32>
    %c0_20 = arith.constant 0 : index
    %c0_21 = arith.constant 0 : index
    %44 = vector.load %arg4[%c0_20, %c0_21] : memref<128x128xf32, #tpu.memory_space<vmem>>, vector<128x128xf32>
    %cst_22 = arith.constant dense<0.000000e+00> : vector<16x128xf32>
    %45 = tpu.matmul %43, %44, %cst_22 {dimension_numbers = #tpu.dot_dimension_numbers<[1], [0], [0], [1], [0, 0, 1, 1], [], []>} : vector<16x128xf32>, vector<128x128xf32>, vector<16x128xf32> -> vector<16x128xf32>
    %c0_23 = arith.constant 0 : index
    %c0_24 = arith.constant 0 : index
    %46 = vector.load %arg5[%c0_23, %c0_24] : memref<3x128xf32, #tpu.memory_space<vmem>>, vector<1x128xf32>
    %47 = vector.broadcast %46 : vector<1x128xf32> to vector<16x128xf32>
    %48 = arith.addf %45, %47 : vector<16x128xf32>
    %49 = vector.shape_cast %48 : vector<16x128xf32> to vector<2x8x128xf32>
    %c1_25 = arith.constant 1 : index
    %c0_26 = arith.constant 0 : index
    %50 = vector.load %arg5[%c1_25, %c0_26] : memref<3x128xf32, #tpu.memory_space<vmem>>, vector<1x128xf32>
    %c2_27 = arith.constant 2 : index
    %c0_28 = arith.constant 0 : index
    %51 = vector.load %arg5[%c2_27, %c0_28] : memref<3x128xf32, #tpu.memory_space<vmem>>, vector<1x128xf32>
    %c0_29 = arith.constant 0 : index
    %c0_30 = arith.constant 0 : index
    %52 = vector.load %arg8[%c0_29, %c0_30] : memref<128x128xf32, #tpu.memory_space<vmem>>, vector<128x128xf32>
    %cst_31 = arith.constant dense<0.000000e+00> : vector<2x128xf32>
    %53 = vector.multi_reduction <add>, %49, %cst_31 [1] : vector<2x8x128xf32> to vector<2x128xf32>
    %cst_32 = arith.constant dense<0.000000e+00> : vector<2x128xf32>
    %54 = tpu.matmul %53, %52, %cst_32 {dimension_numbers = #tpu.dot_dimension_numbers<[1], [0], [0], [1], [0, 0, 1, 1], [], []>} : vector<2x128xf32>, vector<128x128xf32>, vector<2x128xf32> -> vector<2x128xf32>
    %cst_33 = arith.constant 6.250000e-02 : f32
    %55 = vector.broadcast %cst_33 : f32 to vector<2x128xf32>
    %56 = arith.mulf %54, %55 : vector<2x128xf32>
    %57 = vector.shape_cast %56 : vector<2x128xf32> to vector<2x1x128xf32>
    %58 = vector.broadcast %57 : vector<2x1x128xf32> to vector<2x8x128xf32>
    %59 = arith.subf %49, %58 : vector<2x8x128xf32>
    %60 = arith.mulf %59, %59 : vector<2x8x128xf32>
    %cst_34 = arith.constant dense<0.000000e+00> : vector<2x128xf32>
    %61 = vector.multi_reduction <add>, %60, %cst_34 [1] : vector<2x8x128xf32> to vector<2x128xf32>
    %cst_35 = arith.constant dense<0.000000e+00> : vector<2x128xf32>
    %62 = tpu.matmul %61, %52, %cst_35 {dimension_numbers = #tpu.dot_dimension_numbers<[1], [0], [0], [1], [0, 0, 1, 1], [], []>} : vector<2x128xf32>, vector<128x128xf32>, vector<2x128xf32> -> vector<2x128xf32>
    %cst_36 = arith.constant 6.250000e-02 : f32
    %63 = vector.broadcast %cst_36 : f32 to vector<2x128xf32>
    %64 = arith.mulf %62, %63 : vector<2x128xf32>
    %cst_37 = arith.constant 9.99999974E-6 : f32
    %65 = vector.broadcast %cst_37 : f32 to vector<2x128xf32>
    %66 = arith.addf %64, %65 : vector<2x128xf32>
    %67 = math.rsqrt %66 : vector<2x128xf32>
    %68 = vector.shape_cast %67 : vector<2x128xf32> to vector<2x1x128xf32>
    %69 = vector.broadcast %68 : vector<2x1x128xf32> to vector<2x8x128xf32>
    %70 = arith.mulf %59, %69 : vector<2x8x128xf32>
    %71 = vector.shape_cast %50 : vector<1x128xf32> to vector<1x1x128xf32>
    %72 = vector.broadcast %71 : vector<1x1x128xf32> to vector<2x8x128xf32>
    %73 = arith.mulf %70, %72 : vector<2x8x128xf32>
    %74 = vector.shape_cast %51 : vector<1x128xf32> to vector<1x1x128xf32>
    %75 = vector.broadcast %74 : vector<1x1x128xf32> to vector<2x8x128xf32>
    %76 = arith.addf %73, %75 : vector<2x8x128xf32>
    %cst_38 = arith.constant 5.000000e-01 : f32
    %77 = vector.broadcast %cst_38 : f32 to vector<2x8x128xf32>
    %78 = arith.mulf %77, %76 : vector<2x8x128xf32>
    %cst_39 = arith.constant 0.707106769 : f32
    %79 = vector.broadcast %cst_39 : f32 to vector<2x8x128xf32>
    %80 = arith.mulf %76, %79 : vector<2x8x128xf32>
    %81 = math.erf %80 : vector<2x8x128xf32>
    %cst_40 = arith.constant 1.000000e+00 : f32
    %82 = vector.broadcast %cst_40 : f32 to vector<2x8x128xf32>
    %83 = arith.addf %82, %81 : vector<2x8x128xf32>
    %84 = arith.mulf %78, %83 : vector<2x8x128xf32>
    %85 = vector.shape_cast %84 : vector<2x8x128xf32> to vector<16x128xf32>
    %c0_41 = arith.constant 0 : index
    %c0_42 = arith.constant 0 : index
    %86 = vector.load %arg6[%c0_41, %c0_42] : memref<128x128xf32, #tpu.memory_space<vmem>>, vector<128x128xf32>
    %cst_43 = arith.constant dense<0.000000e+00> : vector<16x128xf32>
    %87 = tpu.matmul %85, %86, %cst_43 {dimension_numbers = #tpu.dot_dimension_numbers<[1], [0], [0], [1], [0, 0, 1, 1], [], []>} : vector<16x128xf32>, vector<128x128xf32>, vector<16x128xf32> -> vector<16x128xf32>
    %c0_44 = arith.constant 0 : index
    %c0_45 = arith.constant 0 : index
    %88 = vector.load %arg7[%c0_44, %c0_45] : memref<3x128xf32, #tpu.memory_space<vmem>>, vector<1x128xf32>
    %89 = vector.broadcast %88 : vector<1x128xf32> to vector<16x128xf32>
    %90 = arith.addf %87, %89 : vector<16x128xf32>
    %91 = vector.shape_cast %90 : vector<16x128xf32> to vector<2x8x128xf32>
    %c0_46 = arith.constant 0 : index
    %c0_47 = arith.constant 0 : index
    %c0_48 = arith.constant 0 : index
    %92 = vector.load %arg9[%c0_46, %c0_47, %c0_48] : memref<2x8x128xf32, #tpu.memory_space<vmem>>, vector<2x8x128xf32>
    tpu.vector_store %arg9[%c0_46, %c0_47, %c0_48], %91 {strides = array<i32>} : memref<2x8x128xf32, #tpu.memory_space<vmem>>, vector<2x8x128xf32>,
    return
  }
  func.func @transform_0(%arg0: i32) -> (i32, i32, i32) {
    %c0_i32 = arith.constant 0 : i32
    %c0_i32_0 = arith.constant 0 : i32
    %c0_i32_1 = arith.constant 0 : i32
    return %arg0, %c0_i32, %c0_i32_0 : i32, i32, i32
  }
  func.func @transform_1(%arg0: i32) -> (i32, i32) {
    %c0_i32 = arith.constant 0 : i32
    %c0_i32_0 = arith.constant 0 : i32
    %c0_i32_1 = arith.constant 0 : i32
    return %c0_i32, %c0_i32_0 : i32, i32
  }
  func.func @transform_2(%arg0: i32) -> (i32, i32) {
    %c0_i32 = arith.constant 0 : i32
    %c0_i32_0 = arith.constant 0 : i32
    %c0_i32_1 = arith.constant 0 : i32
    return %c0_i32, %c0_i32_0 : i32, i32
  }
  func.func @transform_3(%arg0: i32) -> (i32, i32) {
    %c0_i32 = arith.constant 0 : i32
    %c0_i32_0 = arith.constant 0 : i32
    %c0_i32_1 = arith.constant 0 : i32
    return %c0_i32, %c0_i32_0 : i32, i32
  }
  func.func @transform_4(%arg0: i32) -> (i32, i32) {
    %c0_i32 = arith.constant 0 : i32
    %c0_i32_0 = arith.constant 0 : i32
    %c0_i32_1 = arith.constant 0 : i32
    return %c0_i32, %c0_i32_0 : i32, i32
  }
  func.func @transform_5(%arg0: i32) -> (i32, i32) {
    %c0_i32 = arith.constant 0 : i32
    %c0_i32_0 = arith.constant 0 : i32
    %c0_i32_1 = arith.constant 0 : i32
    return %c0_i32, %c0_i32_0 : i32, i32
  }
  func.func @transform_6(%arg0: i32) -> (i32, i32) {
    %c0_i32 = arith.constant 0 : i32
    %c0_i32_0 = arith.constant 0 : i32
    %c0_i32_1 = arith.constant 0 : i32
    return %c0_i32, %c0_i32_0 : i32, i32
  }
  func.func @transform_7(%arg0: i32) -> (i32, i32) {
    %c0_i32 = arith.constant 0 : i32
    %c0_i32_0 = arith.constant 0 : i32
    %c0_i32_1 = arith.constant 0 : i32
    return %c0_i32, %c0_i32_0 : i32, i32
  }
  func.func @transform_8(%arg0: i32) -> (i32, i32, i32) {
    %c0_i32 = arith.constant 0 : i32
    %c0_i32_0 = arith.constant 0 : i32
    %c0_i32_1 = arith.constant 0 : i32
    return %arg0, %c0_i32, %c0_i32_0 : i32, i32, i32
  }
}

module attributes {stable_mosaic.version = 11 : i64} {
  func.func @kernel(%arg0: i32, %arg1: memref<2x8x64xf32, #tpu.memory_space<vmem>>, %arg2: memref<64x128xf32, #tpu.memory_space<vmem>>, %arg3: memref<3x128xf32, #tpu.memory_space<vmem>>, %arg4: memref<128x128xf32, #tpu.memory_space<vmem>>, %arg5: memref<3x128xf32, #tpu.memory_space<vmem>>, %arg6: memref<128x128xf32, #tpu.memory_space<vmem>>, %arg7: memref<3x128xf32, #tpu.memory_space<vmem>>, %arg8: memref<128x128xf32, #tpu.memory_space<vmem>>, %arg9: memref<2x8x128xf32, #tpu.memory_space<vmem>>) attributes {dimension_semantics = [#tpu.dimension_semantics<parallel>], iteration_bounds = array<i64: 1>, scalar_prefetch = 0 : i64, scratch_operands = 0 : i64, tpu.core_type = #tpu.core_type<tc>, window_params = [{transform_indices = @transform_0, window_bounds = array<i64: 2, 8, 64>}, {pipeline_mode = #tpu.pipeline_mode<synchronous>, transform_indices = @transform_1, window_bounds = array<i64: 64, 128>}, {pipeline_mode = #tpu.pipeline_mode<synchronous>, transform_indices = @transform_2, window_bounds = array<i64: 3, 128>}, {pipeline_mode = #tpu.pipeline_mode<synchronous>, transform_indices = @transform_3, window_bounds = array<i64: 128, 128>}, {pipeline_mode = #tpu.pipeline_mode<synchronous>, transform_indices = @transform_4, window_bounds = array<i64: 3, 128>}, {pipeline_mode = #tpu.pipeline_mode<synchronous>, transform_indices = @transform_5, window_bounds = array<i64: 128, 128>}, {pipeline_mode = #tpu.pipeline_mode<synchronous>, transform_indices = @transform_6, window_bounds = array<i64: 3, 128>}, {pipeline_mode = #tpu.pipeline_mode<synchronous>, transform_indices = @transform_7, window_bounds = array<i64: 128, 128>}, {transform_indices = @transform_8, window_bounds = array<i64: 2, 8, 128>}]} {
    %c0 = arith.constant 0 : index
    %c0_0 = arith.constant 0 : index
    %c0_1 = arith.constant 0 : index
    %0 = vector.load %arg1[%c0, %c0_0, %c0_1] : memref<2x8x64xf32, #tpu.memory_space<vmem>>, vector<2x8x64xf32>
    %1 = vector.shape_cast %0 : vector<2x8x64xf32> to vector<16x64xf32>
    %c0_2 = arith.constant 0 : index
    %c0_3 = arith.constant 0 : index
    %2 = vector.load %arg2[%c0_2, %c0_3] : memref<64x128xf32, #tpu.memory_space<vmem>>, vector<64x128xf32>
    %cst = arith.constant dense<0.000000e+00> : vector<16x128xf32>
    %3 = tpu.matmul %1, %2, %cst {dimension_numbers = #tpu.dot_dimension_numbers<[1], [0], [0], [1], [0, 0, 1, 1], [], []>} : vector<16x64xf32>, vector<64x128xf32>, vector<16x128xf32> -> vector<16x128xf32>
    %c0_4 = arith.constant 0 : index
    %c0_5 = arith.constant 0 : index
    %4 = vector.load %arg3[%c0_4, %c0_5] : memref<3x128xf32, #tpu.memory_space<vmem>>, vector<1x128xf32>
    %5 = vector.broadcast %4 : vector<1x128xf32> to vector<16x128xf32>
    %6 = arith.addf %3, %5 : vector<16x128xf32>
    %7 = vector.shape_cast %6 : vector<16x128xf32> to vector<2x8x128xf32>
    %c1 = arith.constant 1 : index
    %c0_6 = arith.constant 0 : index
    %8 = vector.load %arg3[%c1, %c0_6] : memref<3x128xf32, #tpu.memory_space<vmem>>, vector<1x128xf32>
    %c2 = arith.constant 2 : index
    %c0_7 = arith.constant 0 : index
    %9 = vector.load %arg3[%c2, %c0_7] : memref<3x128xf32, #tpu.memory_space<vmem>>, vector<1x128xf32>
    %c0_8 = arith.constant 0 : index
    %c0_9 = arith.constant 0 : index
    %10 = vector.load %arg8[%c0_8, %c0_9] : memref<128x128xf32, #tpu.memory_space<vmem>>, vector<128x128xf32>
    %cst_10 = arith.constant dense<0.000000e+00> : vector<2x128xf32>
    %11 = vector.multi_reduction <add>, %7, %cst_10 [1] : vector<2x8x128xf32> to vector<2x128xf32>
    %cst_11 = arith.constant dense<0.000000e+00> : vector<2x128xf32>
    %12 = tpu.matmul %11, %10, %cst_11 {dimension_numbers = #tpu.dot_dimension_numbers<[1], [0], [0], [1], [0, 0, 1, 1], [], []>} : vector<2x128xf32>, vector<128x128xf32>, vector<2x128xf32> -> vector<2x128xf32>
    %cst_12 = arith.constant 6.250000e-02 : f32
    %13 = vector.broadcast %cst_12 : f32 to vector<2x128xf32>
    %14 = arith.mulf %12, %13 : vector<2x128xf32>
    %15 = vector.shape_cast %14 : vector<2x128xf32> to vector<2x1x128xf32>
    %16 = vector.broadcast %15 : vector<2x1x128xf32> to vector<2x8x128xf32>
    %17 = arith.subf %7, %16 : vector<2x8x128xf32>
    %18 = arith.mulf %17, %17 : vector<2x8x128xf32>
    %cst_13 = arith.constant dense<0.000000e+00> : vector<2x128xf32>
    %19 = vector.multi_reduction <add>, %18, %cst_13 [1] : vector<2x8x128xf32> to vector<2x128xf32>
    %cst_14 = arith.constant dense<0.000000e+00> : vector<2x128xf32>
    %20 = tpu.matmul %19, %10, %cst_14 {dimension_numbers = #tpu.dot_dimension_numbers<[1], [0], [0], [1], [0, 0, 1, 1], [], []>} : vector<2x128xf32>, vector<128x128xf32>, vector<2x128xf32> -> vector<2x128xf32>
    %cst_15 = arith.constant 6.250000e-02 : f32
    %21 = vector.broadcast %cst_15 : f32 to vector<2x128xf32>
    %22 = arith.mulf %20, %21 : vector<2x128xf32>
    %cst_16 = arith.constant 9.99999974E-6 : f32
    %23 = vector.broadcast %cst_16 : f32 to vector<2x128xf32>
    %24 = arith.addf %22, %23 : vector<2x128xf32>
    %25 = math.rsqrt %24 : vector<2x128xf32>
    %26 = vector.shape_cast %25 : vector<2x128xf32> to vector<2x1x128xf32>
    %27 = vector.broadcast %26 : vector<2x1x128xf32> to vector<2x8x128xf32>
    %28 = arith.mulf %17, %27 : vector<2x8x128xf32>
    %29 = vector.shape_cast %8 : vector<1x128xf32> to vector<1x1x128xf32>
    %30 = vector.broadcast %29 : vector<1x1x128xf32> to vector<2x8x128xf32>
    %31 = arith.mulf %28, %30 : vector<2x8x128xf32>
    %32 = vector.shape_cast %9 : vector<1x128xf32> to vector<1x1x128xf32>
    %33 = vector.broadcast %32 : vector<1x1x128xf32> to vector<2x8x128xf32>
    %34 = arith.addf %31, %33 : vector<2x8x128xf32>
    %cst_17 = arith.constant 5.000000e-01 : f32
    %35 = vector.broadcast %cst_17 : f32 to vector<2x8x128xf32>
    %36 = arith.mulf %35, %34 : vector<2x8x128xf32>
    %cst_18 = arith.constant 0.707106769 : f32
    %37 = vector.broadcast %cst_18 : f32 to vector<2x8x128xf32>
    %38 = arith.mulf %34, %37 : vector<2x8x128xf32>
    %39 = math.erf %38 : vector<2x8x128xf32>
    %cst_19 = arith.constant 1.000000e+00 : f32
    %40 = vector.broadcast %cst_19 : f32 to vector<2x8x128xf32>
    %41 = arith.addf %40, %39 : vector<2x8x128xf32>
    %42 = arith.mulf %36, %41 : vector<2x8x128xf32>
    %43 = vector.shape_cast %42 : vector<2x8x128xf32> to vector<16x128xf32>
    %c0_20 = arith.constant 0 : index
    %c0_21 = arith.constant 0 : index
    %44 = vector.load %arg4[%c0_20, %c0_21] : memref<128x128xf32, #tpu.memory_space<vmem>>, vector<128x128xf32>
    %cst_22 = arith.constant dense<0.000000e+00> : vector<16x128xf32>
    %45 = tpu.matmul %43, %44, %cst_22 {dimension_numbers = #tpu.dot_dimension_numbers<[1], [0], [0], [1], [0, 0, 1, 1], [], []>} : vector<16x128xf32>, vector<128x128xf32>, vector<16x128xf32> -> vector<16x128xf32>
    %c0_23 = arith.constant 0 : index
    %c0_24 = arith.constant 0 : index
    %46 = vector.load %arg5[%c0_23, %c0_24] : memref<3x128xf32, #tpu.memory_space<vmem>>, vector<1x128xf32>
    %47 = vector.broadcast %46 : vector<1x128xf32> to vector<16x128xf32>
    %48 = arith.addf %45, %47 : vector<16x128xf32>
    %49 = vector.shape_cast %48 : vector<16x128xf32> to vector<2x8x128xf32>
    %c1_25 = arith.constant 1 : index
    %c0_26 = arith.constant 0 : index
    %50 = vector.load %arg5[%c1_25, %c0_26] : memref<3x128xf32, #tpu.memory_space<vmem>>, vector<1x128xf32>
    %c2_27 = arith.constant 2 : index
    %c0_28 = arith.constant 0 : index
    %51 = vector.load %arg5[%c2_27, %c0_28] : memref<3x128xf32, #tpu.memory_space<vmem>>, vector<1x128xf32>
    %c0_29 = arith.constant 0 : index
    %c0_30 = arith.constant 0 : index
    %52 = vector.load %arg8[%c0_29, %c0_30] : memref<128x128xf32, #tpu.memory_space<vmem>>, vector<128x128xf32>
    %cst_31 = arith.constant dense<0.000000e+00> : vector<2x128xf32>
    %53 = vector.multi_reduction <add>, %49, %cst_31 [1] : vector<2x8x128xf32> to vector<2x128xf32>
    %cst_32 = arith.constant dense<0.000000e+00> : vector<2x128xf32>
    %54 = tpu.matmul %53, %52, %cst_32 {dimension_numbers = #tpu.dot_dimension_numbers<[1], [0], [0], [1], [0, 0, 1, 1], [], []>} : vector<2x128xf32>, vector<128x128xf32>, vector<2x128xf32> -> vector<2x128xf32>
    %cst_33 = arith.constant 6.250000e-02 : f32
    %55 = vector.broadcast %cst_33 : f32 to vector<2x128xf32>
    %56 = arith.mulf %54, %55 : vector<2x128xf32>
    %57 = vector.shape_cast %56 : vector<2x128xf32> to vector<2x1x128xf32>
    %58 = vector.broadcast %57 : vector<2x1x128xf32> to vector<2x8x128xf32>
    %59 = arith.subf %49, %58 : vector<2x8x128xf32>
    %60 = arith.mulf %59, %59 : vector<2x8x128xf32>
    %cst_34 = arith.constant dense<0.000000e+00> : vector<2x128xf32>
    %61 = vector.multi_reduction <add>, %60, %cst_34 [1] : vector<2x8x128xf32> to vector<2x128xf32>
    %cst_35 = arith.constant dense<0.000000e+00> : vector<2x128xf32>
    %62 = tpu.matmul %61, %52, %cst_35 {dimension_numbers = #tpu.dot_dimension_numbers<[1], [0], [0], [1], [0, 0, 1, 1], [], []>} : vector<2x128xf32>, vector<128x128xf32>, vector<2x128xf32> -> vector<2x128xf32>
    %cst_36 = arith.constant 6.250000e-02 : f32
    %63 = vector.broadcast %cst_36 : f32 to vector<2x128xf32>
    %64 = arith.mulf %62, %63 : vector<2x128xf32>
    %cst_37 = arith.constant 9.99999974E-6 : f32
    %65 = vector.broadcast %cst_37 : f32 to vector<2x128xf32>
    %66 = arith.addf %64, %65 : vector<2x128xf32>
    %67 = math.rsqrt %66 : vector<2x128xf32>
    %68 = vector.shape_cast %67 : vector<2x128xf32> to vector<2x1x128xf32>
    %69 = vector.broadcast %68 : vector<2x1x128xf32> to vector<2x8x128xf32>
    %70 = arith.mulf %59, %69 : vector<2x8x128xf32>
    %71 = vector.shape_cast %50 : vector<1x128xf32> to vector<1x1x128xf32>
    %72 = vector.broadcast %71 : vector<1x1x128xf32> to vector<2x8x128xf32>
    %73 = arith.mulf %70, %72 : vector<2x8x128xf32>
    %74 = vector.shape_cast %51 : vector<1x128xf32> to vector<1x1x128xf32>
    %75 = vector.broadcast %74 : vector<1x1x128xf32> to vector<2x8x128xf32>
    %76 = arith.addf %73, %75 : vector<2x8x128xf32>
    %cst_38 = arith.constant 5.000000e-01 : f32
    %77 = vector.broadcast %cst_38 : f32 to vector<2x8x128xf32>
    %78 = arith.mulf %77, %76 : vector<2x8x128xf32>
    %cst_39 = arith.constant 0.707106769 : f32
    %79 = vector.broadcast %cst_39 : f32 to vector<2x8x128xf32>
    %80 = arith.mulf %76, %79 : vector<2x8x128xf32>
    %81 = math.erf %80 : vector<2x8x128xf32>
    %cst_40 = arith.constant 1.000000e+00 : f32
    %82 = vector.broadcast %cst_40 : f32 to vector<2x8x128xf32>
    %83 = arith.addf %82, %81 : vector<2x8x128xf32>
    %84 = arith.mulf %78, %83 : vector<2x8x128xf32>
    %85 = vector.shape_cast %84 : vector<2x8x128xf32> to vector<16x128xf32>
    %c0_41 = arith.constant 0 : index
    %c0_42 = arith.constant 0 : index
    %86 = vector.load %arg6[%c0_41, %c0_42] : memref<128x128xf32, #tpu.memory_space<vmem>>, vector<128x128xf32>
    %cst_43 = arith.constant dense<0.000000e+00> : vector<16x128xf32>
    %87 = tpu.matmul %85, %86, %cst_43 {dimension_numbers = #tpu.dot_dimension_numbers<[1], [0], [0], [1], [0, 0, 1, 1], [], []>} : vector<16x128xf32>, vector<128x128xf32>, vector<16x128xf32> -> vector<16x128xf32>
    %c0_44 = arith.constant 0 : index
    %c0_45 = arith.constant 0 : index
    %88 = vector.load %arg7[%c0_44, %c0_45] : memref<3x128xf32, #tpu.memory_space<vmem>>, vector<1x128xf32>
    %89 = vector.broadcast %88 : vector<1x128xf32> to vector<16x128xf32>
    %90 = arith.addf %87, %89 : vector<16x128xf32>
    %91 = vector.shape_cast %90 : vector<16x128xf32> to vector<2x8x128xf32>
    %c0_46 = arith.constant 0 : index
    %c0_47 = arith.constant 0 : index
    %c0_48 = arith.constant 0 : index
    %92 = vector.load %arg9[%c0_46, %c0_47, %c0_48] : memref<2x8x128xf32, #tpu.memory_space<vmem>>, vector<2x8x128xf32>
    tpu.vector_store %arg9[%c0_46, %c0_47, %c0_48], %91 {strides = array<i32>} : memref<2x8x128xf32, #tpu.memory_space<vmem>>, vector<2x8x128xf32>,
    return
  }
  func.func @transform_0(%arg0: i32) -> (i32, i32, i32) {
    %c0_i32 = arith.constant 0 : i32
    %c0_i32_0 = arith.constant 0 : i32
    %c0_i32_1 = arith.constant 0 : i32
    return %arg0, %c0_i32, %c0_i32_0 : i32, i32, i32
  }
  func.func @transform_1(%arg0: i32) -> (i32, i32) {
    %c0_i32 = arith.constant 0 : i32
    %c0_i32_0 = arith.constant 0 : i32
    %c0_i32_1 = arith.constant 0 : i32
    return %c0_i32, %c0_i32_0 : i32, i32
  }
  func.func @transform_2(%arg0: i32) -> (i32, i32) {
    %c0_i32 = arith.constant 0 : i32
    %c0_i32_0 = arith.constant 0 : i32
    %c0_i32_1 = arith.constant 0 : i32
    return %c0_i32, %c0_i32_0 : i32, i32
  }
  func.func @transform_3(%arg0: i32) -> (i32, i32) {
    %c0_i32 = arith.constant 0 : i32
    %c0_i32_0 = arith.constant 0 : i32
    %c0_i32_1 = arith.constant 0 : i32
    return %c0_i32, %c0_i32_0 : i32, i32
  }
  func.func @transform_4(%arg0: i32) -> (i32, i32) {
    %c0_i32 = arith.constant 0 : i32
    %c0_i32_0 = arith.constant 0 : i32
    %c0_i32_1 = arith.constant 0 : i32
    return %c0_i32, %c0_i32_0 : i32, i32
  }
  func.func @transform_5(%arg0: i32) -> (i32, i32) {
    %c0_i32 = arith.constant 0 : i32
    %c0_i32_0 = arith.constant 0 : i32
    %c0_i32_1 = arith.constant 0 : i32
    return %c0_i32, %c0_i32_0 : i32, i32
  }
  func.func @transform_6(%arg0: i32) -> (i32, i32) {
    %c0_i32 = arith.constant 0 : i32
    %c0_i32_0 = arith.constant 0 : i32
    %c0_i32_1 = arith.constant 0 : i32
    return %c0_i32, %c0_i32_0 : i32, i32
  }
  func.func @transform_7(%arg0: i32) -> (i32, i32) {
    %c0_i32 = arith.constant 0 : i32
    %c0_i32_0 = arith.constant 0 : i32
    %c0_i32_1 = arith.constant 0 : i32
    return %c0_i32, %c0_i32_0 : i32, i32
  }
  func.func @transform_8(%arg0: i32) -> (i32, i32, i32) {
    %c0_i32 = arith.constant 0 : i32
    %c0_i32_0 = arith.constant 0 : i32
    %c0_i32_1 = arith.constant 0 : i32
    return %arg0, %c0_i32, %c0_i32_0 : i32, i32, i32
  }
}

</mosaic_0001>

<bundles_post_ra>
// kernel: tpu_custom_call.1
= control target key start
LH: loop header
LB: loop body
LE: loop exit
PB: predicated region body
PF: predicated region fallthrough
CT: control target
= control target key end

     0   :  { %13 = vsyncpa [#allocation3], 0  ;;  %s1834_s0 = inlined_call_operand.hbm [shape: f32[2,8,64], index: 0, kind: input, shape index: {}]   ;;  %s1835_s1 = inlined_call_operand.hbm [shape: f32[64,128], index: 1, kind: input, shape index: {}]   ;;  %s1836_s2 = inlined_call_operand.hbm [shape: f32[3,128], index: 2, kind: input, shape index: {}]   ;;  %s1837_s3 = inlined_call_operand.hbm [shape: f32[128,128], index: 3, kind: input, shape index: {}]   ;;  %s1838_s4 = inlined_call_operand.vmem [shape: f32[3,128], index: 4, kind: input, shape index: {}]   ;;  %s1839_s5 = inlined_call_operand.hbm [shape: f32[128,128], index: 5, kind: input, shape index: {}]   ;;  %s1840_s6 = inlined_call_operand.vmem [shape: f32[3,128], index: 6, kind: input, shape index: {}]   ;;  %s1841_s7 = inlined_call_operand.hbm [shape: f32[128,128], index: 7, kind: input, shape index: {}]   ;;  %s1842_s8 = inlined_call_operand.hbm [shape: f32[2,8,128], index: 8, kind: output, shape index: {}]  }
   0x1   :  { %14 = vsyncpa [#allocation6], 0 }
   0x2   :  { %15 = vsyncpa [#allocation9], 0 }
   0x3   :  { %16 = vsyncpa [#allocation12], 0 }
   0x4   :  { %17 = vsyncpa [#allocation4], 0  ;;  %s1508_s27 = smov [#allocation5]   ;;  %s1509_s29 = smov [#allocation8]  }
   0x5   :  { %s35_s28 = sshll.u32 %s1508_s27, 4  ;;  %s57_s30 = sshll.u32 %s1509_s29, 4  ;;  %s36_s28 = int_to_ptr.vmem [resolvable:$true] %s35_s28  ;;  %s58_s30 = int_to_ptr.vmem [resolvable:$true] %s57_s30 }
   0x6   :  { %s1366_s9 = scalar_lea.vmem %s36_s28, 1024  ;;  %p1371_p1 = scmp.lt.s32.totalorder %s36_s28, %s36_s28 }
   0x7   :  { %p1367_p0 = scmp.ne.s32.totalorder %s36_s28, %s1366_s9  ;;  %p1372_p2 = scmp.lt.s32.totalorder %s1366_s9, %s1366_s9 }
   0x9   :  { %p1373_p3 = por %p1372_p2, %p1371_p1 }
   0xb   :  { %p1374_p4 = pnand %p1373_p3, %p1367_p0 }
   0xd   :  { %1377 = shalt.err (!%p1374_p4)
}
   0xe   :  { %s1510_s10 = smov 128   ;;  %s1511_s11 = smov 8  }
   0xf   :  { %41 = dma.hbm_to_vmem [thread:$0]  %s1835_s1, 1024, %s36_s28, [#allocation6], %s1510_s10, %s1510_s10, %s1511_s11  }
  0x10   :  { %s1386_s14 = scalar_lea.vmem %s58_s30, 2048  ;;  %p1391_p6 = scmp.lt.s32.totalorder %s58_s30, %s58_s30 }
  0x11   :  { %p1387_p5 = scmp.ne.s32.totalorder %s58_s30, %s1386_s14  ;;  %p1392_p7 = scmp.lt.s32.totalorder %s1386_s14, %s1386_s14 }
  0x13   :  { %p1393_p8 = por %p1392_p7, %p1391_p6 }
  0x15   :  { %p1394_p9 = pnand %p1393_p8, %p1387_p5 }
  0x17   :  { %1397 = shalt.err (!%p1394_p9)
}
  0x18   :  { %63 = dma.hbm_to_vmem [thread:$0]  %s1837_s3, 2048, %s58_s30, [#allocation9], %s1510_s10, %s1510_s10, %s1511_s11  }
  0x19   :  { %s1512_s17 = smov [#allocation2]   ;;  %s1513_s19 = smov [#allocation7]  }
  0x1a   :  { %s23_s18 = sshll.u32 %s1512_s17, 4  ;;  %s48_s20 = sshll.u32 %s1513_s19, 4  ;;  %s24_s18 = int_to_ptr.vmem [resolvable:$true] %s23_s18  ;;  %s49_s20 = int_to_ptr.vmem [resolvable:$true] %s48_s20 }
  0x1b   :  { %s1406_s1 = scalar_lea.vmem %s24_s18, 256  ;;  %p1411_p11 = scmp.lt.s32.totalorder %s24_s18, %s24_s18 }
  0x1c   :  { %p1407_p10 = scmp.ne.s32.totalorder %s24_s18, %s1406_s1  ;;  %p1412_p12 = scmp.lt.s32.totalorder %s1406_s1, %s1406_s1 }
  0x1e   :  { %p1413_p13 = por %p1412_p12, %p1411_p11 }
  0x20   :  { %p1414_p0 = pnand %p1413_p13, %p1407_p10 }
  0x22   :  { %1417 = shalt.err (!%p1414_p0)
}
  0x23   :  { %29 = dma.hbm_to_vmem [thread:$0]  %s1834_s0, 256, %s24_s18, [#allocation3], %s1510_s10, %s1510_s10, %s1511_s11  }
  0x24   :  { %s1426_s3 = scalar_lea.vmem %s49_s20, 64  ;;  %p1431_p2 = scmp.lt.s32.totalorder %s49_s20, %s49_s20 }
  0x25   :  { %p1427_p1 = scmp.ne.s32.totalorder %s49_s20, %s1426_s3  ;;  %p1432_p3 = scmp.lt.s32.totalorder %s1426_s3, %s1426_s3 }
  0x27   :  { %p1433_p4 = por %p1432_p3, %p1431_p2 }
  0x29   :  { %p1434_p5 = pnand %p1433_p4, %p1427_p1 }
  0x2b   :  { %1437 = shalt.err (!%p1434_p5)
}
  0x2c   :  { %51 = dma.hbm_to_vmem [thread:$0]  %s1836_s2, 64, %s49_s20, [#allocation6]  }
  0x2d   :  { %s1514_s25 = smov [#allocation10]   ;;  %s1515_s27 = smov [#allocation11]  }
  0x2e   :  { %s71_s26 = sshll.u32 %s1514_s25, 4  ;;  %s85_s28 = sshll.u32 %s1515_s27, 4  ;;  %s72_s26 = int_to_ptr.vmem [resolvable:$true] %s71_s26  ;;  %s86_s28 = int_to_ptr.vmem [resolvable:$true] %s85_s28 }
  0x2f   :  { %s1446_s29 = scalar_lea.vmem %s72_s26, 2048  ;;  %p1451_p7 = scmp.lt.s32.totalorder %s72_s26, %s72_s26 }
  0x30   :  { %p1447_p6 = scmp.ne.s32.totalorder %s72_s26, %s1446_s29  ;;  %p1452_p8 = scmp.lt.s32.totalorder %s1446_s29, %s1446_s29 }
  0x32   :  { %p1453_p9 = por %p1452_p8, %p1451_p7 }
  0x34   :  { %p1454_p10 = pnand %p1453_p9, %p1447_p6 }
  0x36   :  { %1457 = shalt.err (!%p1454_p10)
}
  0x37   :  { %77 = dma.hbm_to_vmem [thread:$0]  %s1839_s5, 2048, %s72_s26, [#allocation9], %s1510_s10, %s1510_s10, %s1511_s11  }
  0x38   :  { %s1466_s2 = scalar_lea.vmem %s86_s28, 2048  ;;  %p1471_p12 = scmp.lt.s32.totalorder %s86_s28, %s86_s28 }
  0x39   :  { %p1467_p11 = scmp.ne.s32.totalorder %s86_s28, %s1466_s2  ;;  %p1472_p13 = scmp.lt.s32.totalorder %s1466_s2, %s1466_s2 }
  0x3b   :  { %p1473_p0 = por %p1472_p13, %p1471_p12 }
  0x3d   :  { %p1474_p1 = pnand %p1473_p0, %p1467_p11 }
  0x3f   :  { %1477 = shalt.err (!%p1474_p1)
}
  0x40   :  { %91 = dma.hbm_to_vmem [thread:$0]  %s1841_s7, 2048, %s86_s28, [#allocation12], %s1510_s10, %s1510_s10, %s1511_s11  }
  0x41   :  { %1498 = dma.done.wait [#allocation3], 256  }
  0x42   :  { %1499 = vsyncadd [#allocation3], 4294967040 }
  0x43   :  { %1500 = dma.done.wait [#allocation6], 1088  }
  0x44   :  { %1501 = vsyncadd [#allocation6], 4294966208 }
  0x45   :  { %1502 = dma.done.wait [#allocation9], 4096  }
  0x46   :  { %1503 = vsyncadd [#allocation9], 4294963200 }
  0x47   :  { %1504 = dma.done.wait [#allocation12], 2048  }
  0x48   :  { %1505 = vsyncadd [#allocation12], 4294965248  ;;  %v1516_v0 = vmov 0.0   ;;  %v119_v1 = vld [vmem:[#allocation5 + $0x38] sm:$0xff]  ;;  %v118_v2 = vld [vmem:[#allocation5 + $0x30] sm:$0xff]  ;;  %vm125_vm0 = vcmask 523264   ;;  %v317_v47 = vlaneseq }
  0x49   :  { %1124 = vmatprep.subr.mxu1 %v1516_v0  ;;  %1105 = vmatprep.subr.mxu0 %v119_v1  ;;  %v117_v3 = vld [vmem:[#allocation5 + $0x28] sm:$0xff]  ;;  %v110_v4 = vld [vmem:[#allocation2] sm:$0xff]  ;;  %v1600_v5 = vld [vmem:[#allocation11 + $0x78] sm:$0xff]  ;;  %vm1517_vm1 = vmmov 0   ;;  %vm239_vm2 = vcmask 1041409   ;;  %s1519_s18 = smov [#allocation13]  }
  0x4a   :  { %1106 = vmatpush3.msra.mxu0 %v119_v1  ;;  %1121 = vmatprep.mubr.msk.f32.mxu0 %vm125_vm0, %v110_v4  ;;  %v1602_v6 = vld [vmem:[#allocation11 + $0x70] sm:$0xff]  ;;  %v116_v7 = vld [vmem:[#allocation5 + $0x20] sm:$0xff]  ;;  %v1606_v8 = vld [vmem:[#allocation11 + $0x68] sm:$0xff]  ;;  %v1518_v45 = vmov 1966171168   ;;  %v318_v49 = vshrl.u32 %v317_v47, 7 }
  0x4b   :  { %1107 = vmatprep.subr.mxu0 %v118_v2  ;;  %1125 = vmatpush3.msra.mxu1 %v1600_v5  ;;  %v115_v9 = vld [vmem:[#allocation5 + $0x18] sm:$0xff]  ;;  %v1610_v10 = vld [vmem:[#allocation11 + $0x60] sm:$0xff]  ;;  %v114_v11 = vld [vmem:[#allocation5 + $0x10] sm:$0xff]  ;;  %v315_v46 = vunpack.c.l.s4 %v1518_v45  ;;  %s967_s19 = sshll.u32 %s1519_s18, 4  ;;  %s968_s19 = int_to_ptr.vmem [resolvable:$true] %s967_s19 }
  0x4c   :  { %1108 = vmatpush3.msra.mxu0 %v118_v2  ;;  %1126 = vmatprep.subr.mxu1 %v1516_v0  ;;  %v1614_v12 = vld [vmem:[#allocation11 + $0x58] sm:$0xff]  ;;  %v113_v13 = vld [vmem:[#allocation5 + $0x8] sm:$0xff]  ;;  %v1618_v14 = vld [vmem:[#allocation11 + $0x50] sm:$0xff]  ;;  %v1705_v55 = vsub.s32 0, %v318_v49  ;;  %s1478_s20 = scalar_lea.vmem %s968_s19, 256  ;;  %p1483_p3 = scmp.lt.s32.totalorder %s968_s19, %s968_s19 }
  0x4d   :  { %1109 = vmatprep.subr.mxu0 %v117_v3  ;;  %1127 = vmatpush3.msra.mxu1 %v1602_v6  ;;  %v112_v15 = vld [vmem:[#allocation5] sm:$0xff]  ;;  %v1622_v16 = vld [vmem:[#allocation11 + $0x48] sm:$0xff]  ;;  %v111_v17 = vld [vmem:[#allocation2 + $0x8] sm:$0xff]  ;;  %v316_v48 = vunpack.c.0.s8 %v315_v46  ;;  %p1479_p2 = scmp.ne.s32.totalorder %s968_s19, %s1478_s20  ;;  %p1484_p4 = scmp.lt.s32.totalorder %s1478_s20, %s1478_s20 }
  0x4e   :  { %1110 = vmatpush3.msra.mxu0 %v117_v3  ;;  %1128 = vmatprep.subr.mxu1 %v1516_v0  ;;  %v1644_v18 = vld [vmem:[#allocation11 + $0x40] sm:$0xff]  ;;  %v1649_v19 = vld [vmem:[#allocation11 + $0x38] sm:$0xff]  ;;  %v1655_v20 = vld [vmem:[#allocation11 + $0x30] sm:$0xff] }
  0x4f   :  { %1111 = vmatprep.subr.mxu0 %v116_v7  ;;  %1129 = vmatpush3.msra.mxu1 %v1606_v8  ;;  %v1661_v21 = vld [vmem:[#allocation11 + $0x28] sm:$0xff]  ;;  %v1667_v22 = vld [vmem:[#allocation11 + $0x20] sm:$0xff]  ;;  %v1673_v23 = vld [vmem:[#allocation11 + $0x18] sm:$0xff]  ;;  %v1702_v50 = vsub.s32 %v316_v48, %v318_v49  ;;  %p1485_p5 = por %p1484_p4, %p1483_p3 }
  0x50   :  { %1112 = vmatpush3.msra.mxu0 %v116_v7  ;;  %1130 = vmatprep.subr.mxu1 %v1516_v0  ;;  %v1677_v24 = vld [vmem:[#allocation11 + $0x10] sm:$0xff]  ;;  %v1681_v25 = vld [vmem:[#allocation11 + $0x8] sm:$0xff]  ;;  %v1688_v26 = vld [vmem:[#allocation11] sm:$0xff] }
  0x51   :  { %1113 = vmatprep.subr.mxu0 %v115_v9  ;;  %1131 = vmatpush3.msra.mxu1 %v1610_v10  ;;  %v982_v27 = vld [vmem:[#allocation7] ss:$0 sm:$0xff]  ;;  %v497_v45 = vld [vmem:[#allocation8 + $0x8] sm:$0xff]  ;;  %v496_v46 = vld [vmem:[#allocation8] sm:$0xff]  ;;  %p1486_p6 = pnand %p1485_p5, %p1479_p2 }
  0x52   :  { %1114 = vmatpush3.msra.mxu0 %v115_v9  ;;  %1132 = vmatprep.subr.mxu1 %v1516_v0 }
  0x53   :  { %1115 = vmatprep.subr.mxu0 %v114_v11  ;;  %1133 = vmatpush3.msra.mxu1 %v1614_v12 }
  0x54   :  { %1116 = vmatpush3.msra.mxu0 %v114_v11  ;;  %1134 = vmatprep.subr.mxu1 %v1516_v0 }
  0x55   :  { %1117 = vmatprep.subr.mxu0 %v113_v13  ;;  %1135 = vmatpush3.msra.mxu1 %v1618_v14 }
  0x56   :  { %1118 = vmatpush3.msra.mxu0 %v113_v13  ;;  %1136 = vmatprep.subr.mxu1 %v1516_v0 }
  0x57   :  { %1119 = vmatprep.subr.mxu0 %v112_v15  ;;  %1137 = vmatpush3.msra.mxu1 %v1622_v16 }
  0x58   :  { %1120 = vmatpush3.msra.mxu0 %v112_v15  ;;  %1138 = vmatprep.subr.mxu1 %v1516_v0 }
  0x59   :  { %1122 = vmatmul.mubr.msk.f32.vlgmr.msra.gmra.mxu0 %vm125_vm0, %v111_v17  ;;  %1159 = vmatprep.subr.mxu0 %v1516_v0 }
  0x5a   :  { %1160 = vmatpush3.msra.mxu0 %v1600_v5  ;;  %1139 = vmatpush3.msra.mxu1 %v1644_v18 }
  0x5b   :  { %1161 = vmatprep.subr.mxu0 %v1516_v0  ;;  %1140 = vmatprep.subr.mxu1 %v1516_v0 }
  0x5c   :  { %1162 = vmatpush3.msra.mxu0 %v1602_v6  ;;  %1141 = vmatpush3.msra.mxu1 %v1649_v19 }
  0x5d   :  { %1163 = vmatprep.subr.mxu0 %v1516_v0  ;;  %1142 = vmatprep.subr.mxu1 %v1516_v0 }
  0x5e   :  { %1164 = vmatpush3.msra.mxu0 %v1606_v8  ;;  %1143 = vmatpush3.msra.mxu1 %v1655_v20 }
  0x5f   :  { %1165 = vmatprep.subr.mxu0 %v1516_v0  ;;  %1144 = vmatprep.subr.mxu1 %v1516_v0 }
  0x60   :  { %1166 = vmatpush3.msra.mxu0 %v1610_v10  ;;  %1145 = vmatpush3.msra.mxu1 %v1661_v21 }
  0x61   :  { %1167 = vmatprep.subr.mxu0 %v1516_v0  ;;  %1146 = vmatprep.subr.mxu1 %v1516_v0 }
  0x62   :  { %1168 = vmatpush3.msra.mxu0 %v1614_v12  ;;  %1147 = vmatpush3.msra.mxu1 %v1667_v22 }
  0x63   :  { %1169 = vmatprep.subr.mxu0 %v1516_v0  ;;  %1148 = vmatprep.subr.mxu1 %v1516_v0 }
  0x64   :  { %1170 = vmatpush3.msra.mxu0 %v1618_v14  ;;  %1149 = vmatpush3.msra.mxu1 %v1673_v23 }
  0x65   :  { %1171 = vmatprep.subr.mxu0 %v1516_v0  ;;  %1150 = vmatprep.subr.mxu1 %v1516_v0 }
  0x66   :  { %1172 = vmatpush3.msra.mxu0 %v1622_v16  ;;  %1156 = vmatprep.mubr.msk.f32.mxu1 %vm1517_vm1, %v1516_v0 }
  0x67   :  { %1173 = vmatprep.subr.mxu0 %v1516_v0  ;;  %1151 = vmatpush3.msra.mxu1 %v1677_v24 }
  0x68   :  { %1174 = vmatpush3.msra.mxu0 %v1644_v18  ;;  %1152 = vmatprep.subr.mxu1 %v1516_v0 }
  0x69   :  { %1175 = vmatprep.subr.mxu0 %v1516_v0  ;;  %1153 = vmatpush3.msra.mxu1 %v1681_v25 }
  0x6a   :  { %1176 = vmatpush3.msra.mxu0 %v1649_v19  ;;  %1154 = vmatprep.subr.mxu1 %v1516_v0 }
  0x6b   :  { %1177 = vmatprep.subr.mxu0 %v1516_v0  ;;  %1155 = vmatpush3.msra.mxu1 %v1688_v26 }
  0x6c   :  { %1178 = vmatpush3.msra.mxu0 %v1655_v20  ;;  %1191 = vmatprep.mubr.msk.f32.mxu0 %vm1517_vm1, %v1516_v0 }
  0x6d   :  { %1179 = vmatprep.subr.mxu0 %v1516_v0 }
  0x6e   :  { %1180 = vmatpush3.msra.mxu0 %v1661_v21 }
  0x6f   :  { %1181 = vmatprep.subr.mxu0 %v1516_v0 }
  0x70   :  { %1182 = vmatpush3.msra.mxu0 %v1667_v22 }
  0x71   :  { %1183 = vmatprep.subr.mxu0 %v1516_v0 }
  0x72   :  { %1184 = vmatpush3.msra.mxu0 %v1673_v23 }
  0x73   :  { %1185 = vmatprep.subr.mxu0 %v1516_v0 }
  0x74   :  { %1186 = vmatpush3.msra.mxu0 %v1677_v24 }
  0x75   :  { %1187 = vmatprep.subr.mxu0 %v1516_v0 }
  0x76   :  { %1188 = vmatpush3.msra.mxu0 %v1681_v25 }
  0x77   :  { %1189 = vmatprep.subr.mxu0 %v1516_v0 }
  0x78   :  { %1190 = vmatpush3.msra.mxu0 %v1688_v26 }
  0x79   :  { %1229 = vmatprep.subr.mxu0 %v1516_v0 }
 0x119   :  { %v1123_v28 = vpop.f32.mrf.mxu0 }
 0x11a   :  { %v204_v29 = vadd.f32 %v1123_v28, %v982_v27 }
 0x11b   :  { %v198_v30 = vpop.f32.mrf.mxu0 }
 0x11c   :  { %v231_v31 = vrot.slane %v204_v29, 4  ;;  %v199_v32 = vadd.f32 %v982_v27, %v198_v30 }
 0x11e   :  { %v232_v33 = vadd.f32 %v231_v31, %v204_v29  ;;  %v225_v34 = vrot.slane %v199_v32, 4  ;;  %v511_v31 = vld [vmem:[#allocation8 + $0x78] sm:$0xff] }
 0x11f   :  { %1194 = vmatprep.subr.mxu1 %v511_v31 }
 0x120   :  { %v233_v35 = vrot.slane %v232_v33, 2  ;;  %v226_v36 = vadd.f32 %v225_v34, %v199_v32  ;;  %v508_v34 = vld [vmem:[#allocation8 + $0x60] sm:$0xff] }
 0x122   :  { %v234_v37 = vadd.f32 %v233_v35, %v232_v33  ;;  %v227_v38 = vrot.slane %v226_v36, 2  ;;  %v509_v33 = vld [vmem:[#allocation8 + $0x68] sm:$0xff]  ;;  %v507_v35 = vld [vmem:[#allocation8 + $0x58] sm:$0xff] }
 0x124   :  { %v228_v39 = vadd.f32 %v227_v38, %v226_v36  ;;  %v235_v40 = vrot.slane %v234_v37, 1  ;;  %v506_v36 = vld [vmem:[#allocation8 + $0x50] sm:$0xff]  ;;  %v504_v38 = vld [vmem:[#allocation8 + $0x40] sm:$0xff] }
 0x126   :  { %v229_v41 = vrot.slane %v228_v39, 1  ;;  %v236_v43 = vadd.f32 %v235_v40, %v234_v37  ;;  %v505_v37 = vld [vmem:[#allocation8 + $0x48] sm:$0xff]  ;;  %v502_v40 = vld [vmem:[#allocation8 + $0x30] sm:$0xff] }
 0x128   :  { %v230_v42 = vadd.f32 %v229_v41, %v228_v39  ;;  %v503_v39 = vld [vmem:[#allocation8 + $0x38] sm:$0xff]  ;;  %v501_v41 = vld [vmem:[#allocation8 + $0x28] sm:$0xff] }
 0x12a   :  { %v240_v44 = vsel %vm239_vm2, %v236_v43, %v230_v42  ;;  %v500_v42 = vld [vmem:[#allocation8 + $0x20] sm:$0xff]  ;;  %v499_v43 = vld [vmem:[#allocation8 + $0x18] sm:$0xff] }
 0x12b   :  { %1157 = vmatmul.mubr.f32.vlgmr.msra.gmra.mxu1 %v240_v44  ;;  %v498_v44 = vld [vmem:[#allocation8 + $0x10] sm:$0xff] }
 0x12c   :  { %1195 = vmatpush3.msra.mxu1 %v511_v31 }
 0x1eb   :  { %v308_v51 = vpop.f32.mrf.mxu1 }
 0x1ec   :  { %v312_v52 = vmul.f32 0.0625, %v308_v51 }
 0x1ed   :  { %v1158_v53 = vpop.f32.mrf.mxu1 }
 0x1ee   :  { %v320_v54 = vrot.slane %v312_v52, %v1702_v50 }
 0x1f0   :  { %v321_v56 = vcombine.high %v320_v54, %v320_v54  ;;  %v328_v57 = vrot.slane %v320_v54, %v1702_v50 }
 0x1f2   :  { %v335_v58 = vrot.slane %v321_v56, %v1702_v50  ;;  %v339_v59 = vrot.slane %v328_v57, %v1705_v55 }
 0x1f4   :  { %v343_v60 = vrot.slane %v335_v58, %v1705_v55  ;;  %v1711_v61 = vsub.f32 %v199_v32, %v339_v59  ;;  %v510_v32 = vld [vmem:[#allocation8 + $0x70] sm:$0xff]  ;;  %v985_v59 = vld [vmem:[#allocation7 + $0x1] ss:$0 sm:$0xff] }
 0x1f5   :  { %1196 = vmatprep.subr.mxu1 %v510_v32 }
 0x1f6   :  { %v1713_v62 = vsub.f32 %v204_v29, %v343_v60  ;;  %v348_v63 = vmul.f32 %v1711_v61, %v1711_v61  ;;  %1197 = vmatpush3.msra.mxu1 %v510_v32 }
 0x1f7   :  { %1198 = vmatprep.subr.mxu1 %v509_v33 }
 0x1f8   :  { %v349_v1 = vmul.f32 %v1713_v62, %v1713_v62  ;;  %v350_v2 = vrot.slane %v348_v63, 4  ;;  %1199 = vmatpush3.msra.mxu1 %v509_v33 }
 0x1f9   :  { %1200 = vmatprep.subr.mxu1 %v508_v34 }
 0x1fa   :  { %v351_v3 = vadd.f32 %v350_v2, %v348_v63  ;;  %v356_v4 = vrot.slane %v349_v1, 4  ;;  %1201 = vmatpush3.msra.mxu1 %v508_v34 }
 0x1fb   :  { %1202 = vmatprep.subr.mxu1 %v507_v35 }
 0x1fc   :  { %v352_v7 = vrot.slane %v351_v3, 2  ;;  %v357_v9 = vadd.f32 %v356_v4, %v349_v1  ;;  %1203 = vmatpush3.msra.mxu1 %v507_v35  ;;  %v986_v1 = vld [vmem:[#allocation7 + $0x2] ss:$0 sm:$0xff] }
 0x1fd   :  { %1204 = vmatprep.subr.mxu1 %v506_v36 }
 0x1fe   :  { %v353_v11 = vadd.f32 %v352_v7, %v351_v3  ;;  %v358_v13 = vrot.slane %v357_v9, 2  ;;  %1205 = vmatpush3.msra.mxu1 %v506_v36 }
 0x1ff   :  { %1206 = vmatprep.subr.mxu1 %v505_v37 }
 0x200   :  { %v354_v15 = vrot.slane %v353_v11, 1  ;;  %v359_v17 = vadd.f32 %v358_v13, %v357_v9  ;;  %1207 = vmatpush3.msra.mxu1 %v505_v37 }
 0x201   :  { %1208 = vmatprep.subr.mxu1 %v504_v38 }
 0x202   :  { %v360_v27 = vrot.slane %v359_v17, 1  ;;  %v355_v28 = vadd.f32 %v354_v15, %v353_v11  ;;  %1209 = vmatpush3.msra.mxu1 %v504_v38 }
 0x203   :  { %1210 = vmatprep.subr.mxu1 %v503_v39 }
 0x204   :  { %v361_v30 = vadd.f32 %v360_v27, %v359_v17  ;;  %1211 = vmatpush3.msra.mxu1 %v503_v39 }
 0x205   :  { %1212 = vmatprep.subr.mxu1 %v502_v40 }
 0x206   :  { %v364_v29 = vsel %vm239_vm2, %v361_v30, %v355_v28  ;;  %1213 = vmatpush3.msra.mxu1 %v502_v40 }
 0x207   :  { %1192 = vmatmul.mubr.f32.vlgmr.msra.gmra.mxu0 %v364_v29  ;;  %1214 = vmatprep.subr.mxu1 %v501_v41 }
 0x208   :  { %1230 = vmatpush3.msra.mxu0 %v1600_v5  ;;  %1261 = vmatprep.mubr.msk.f32.mxu0 %vm1517_vm1, %v1516_v0 }
 0x209   :  { %1231 = vmatprep.subr.mxu0 %v1516_v0  ;;  %1215 = vmatpush3.msra.mxu1 %v501_v41 }
 0x20a   :  { %1232 = vmatpush3.msra.mxu0 %v1602_v6  ;;  %1216 = vmatprep.subr.mxu1 %v500_v42 }
 0x20b   :  { %1233 = vmatprep.subr.mxu0 %v1516_v0  ;;  %1217 = vmatpush3.msra.mxu1 %v500_v42 }
 0x20c   :  { %1234 = vmatpush3.msra.mxu0 %v1606_v8  ;;  %1218 = vmatprep.subr.mxu1 %v499_v43 }
 0x20d   :  { %1235 = vmatprep.subr.mxu0 %v1516_v0  ;;  %1219 = vmatpush3.msra.mxu1 %v499_v43 }
 0x20e   :  { %1236 = vmatpush3.msra.mxu0 %v1610_v10  ;;  %1220 = vmatprep.subr.mxu1 %v498_v44 }
 0x20f   :  { %1237 = vmatprep.subr.mxu0 %v1516_v0  ;;  %1221 = vmatpush3.msra.mxu1 %v498_v44 }
 0x210   :  { %1238 = vmatpush3.msra.mxu0 %v1614_v12  ;;  %1222 = vmatprep.subr.mxu1 %v497_v45 }
 0x211   :  { %1239 = vmatprep.subr.mxu0 %v1516_v0  ;;  %1223 = vmatpush3.msra.mxu1 %v497_v45 }
 0x212   :  { %1240 = vmatpush3.msra.mxu0 %v1618_v14  ;;  %1224 = vmatprep.subr.mxu1 %v496_v46 }
 0x213   :  { %1241 = vmatprep.subr.mxu0 %v1516_v0  ;;  %1225 = vmatpush3.msra.mxu1 %v496_v46 }
 0x214   :  { %1242 = vmatpush3.msra.mxu0 %v1622_v16  ;;  %1264 = vmatprep.subr.mxu1 %v1516_v0 }
 0x215   :  { %1243 = vmatprep.subr.mxu0 %v1516_v0 }
 0x216   :  { %1244 = vmatpush3.msra.mxu0 %v1644_v18 }
 0x217   :  { %1245 = vmatprep.subr.mxu0 %v1516_v0 }
 0x218   :  { %1246 = vmatpush3.msra.mxu0 %v1649_v19 }
 0x219   :  { %1247 = vmatprep.subr.mxu0 %v1516_v0 }
 0x21a   :  { %1248 = vmatpush3.msra.mxu0 %v1655_v20 }
 0x21b   :  { %1249 = vmatprep.subr.mxu0 %v1516_v0 }
 0x21c   :  { %1250 = vmatpush3.msra.mxu0 %v1661_v21 }
 0x21d   :  { %1251 = vmatprep.subr.mxu0 %v1516_v0 }
 0x21e   :  { %1252 = vmatpush3.msra.mxu0 %v1667_v22 }
 0x21f   :  { %1253 = vmatprep.subr.mxu0 %v1516_v0 }
 0x220   :  { %1254 = vmatpush3.msra.mxu0 %v1673_v23 }
 0x221   :  { %1255 = vmatprep.subr.mxu0 %v1516_v0 }
 0x222   :  { %1256 = vmatpush3.msra.mxu0 %v1677_v24 }
 0x223   :  { %1257 = vmatprep.subr.mxu0 %v1516_v0 }
 0x224   :  { %1258 = vmatpush3.msra.mxu0 %v1681_v25 }
 0x225   :  { %1259 = vmatprep.subr.mxu0 %v1516_v0 }
 0x226   :  { %1260 = vmatpush3.msra.mxu0 %v1688_v26 }
 0x2c7   :  { %v432_v47 = vpop.f32.mrf.mxu0 }
 0x2c8   :  { %v436_v48 = vmul.f32 0.0625, %v432_v47 }
 0x2c9   :  { %v1193_v49 = vpop.f32.mrf.mxu0 }
 0x2ca   :  { %v437_v51 = vadd.f32 1e-05, %v436_v48 }
 0x2cc   :  { %1346 = vrsqrt.f32 %v437_v51 }
 0x2d9   :  { %v1347_v52 = vpop.eup %1346 }
 0x2da   :  { %v446_v53 = vrot.slane %v1347_v52, %v1702_v50 }
 0x2dc   :  { %v447_v54 = vcombine.high %v446_v53, %v446_v53  ;;  %v454_v56 = vrot.slane %v446_v53, %v1702_v50 }
 0x2de   :  { %v461_v57 = vrot.slane %v447_v54, %v1702_v50  ;;  %v465_v58 = vrot.slane %v454_v56, %v1705_v55 }
 0x2e0   :  { %v469_v60 = vrot.slane %v461_v57, %v1705_v55  ;;  %v472_v63 = vmul.f32 %v465_v58, %v1711_v61 }
 0x2e2   :  { %v473_v2 = vmul.f32 %v469_v60, %v1713_v62  ;;  %v478_v3 = vmul.f32 %v985_v59, %v472_v63  ;;  %v879_v60 = vld [vmem:[#allocation10 + $0x78] sm:$0xff]  ;;  %v878_v63 = vld [vmem:[#allocation10 + $0x70] sm:$0xff] }
 0x2e3   :  { %1299 = vmatprep.subr.mxu0 %v879_v60 }
 0x2e4   :  { %v479_v4 = vmul.f32 %v985_v59, %v473_v2  ;;  %v484_v7 = vadd.f32 %v986_v1, %v478_v3  ;;  %v876_v2 = vld [vmem:[#allocation10 + $0x60] sm:$0xff]  ;;  %v875_v3 = vld [vmem:[#allocation10 + $0x58] sm:$0xff] }
 0x2e6   :  { %v485_v9 = vadd.f32 %v986_v1, %v479_v4  ;;  %v488_v11 = vmul.f32 0.70710677, %v484_v7  ;;  %v486_v17 = vmul.f32 0.5, %v484_v7  ;;  %v877_v1 = vld [vmem:[#allocation10 + $0x68] sm:$0xff]  ;;  %v874_v4 = vld [vmem:[#allocation10 + $0x50] sm:$0xff] }
 0x2e7   :  { %v873_v7 = vld [vmem:[#allocation10 + $0x48] sm:$0xff] }
 0x2e8   :  { %v489_v13 = vmul.f32 0.70710677, %v485_v9  ;;  %1348 = verf.f32 %v488_v11  ;;  %v487_v29 = vmul.f32 0.5, %v485_v9  ;;  %v872_v9 = vld [vmem:[#allocation10 + $0x40] sm:$0xff]  ;;  %v871_v11 = vld [vmem:[#allocation10 + $0x38] sm:$0xff] }
 0x2ea   :  { %1350 = verf.f32 %v489_v13  ;;  %v870_v13 = vld [vmem:[#allocation10 + $0x30] sm:$0xff] }
 0x2f5   :  { %v1349_v15 = vpop.eup %1348 }
 0x2f6   :  { %v492_v27 = vadd.f32 1.0, %v1349_v15  ;;  %v869_v15 = vld [vmem:[#allocation10 + $0x28] sm:$0xff] }
 0x2f7   :  { %v1351_v28 = vpop.eup %1350 }
 0x2f8   :  { %v494_v30 = vmul.f32 %v492_v27, %v486_v17  ;;  %v493_v31 = vadd.f32 1.0, %v1351_v28  ;;  %v868_v17 = vld [vmem:[#allocation10 + $0x20] sm:$0xff]  ;;  %v867_v27 = vld [vmem:[#allocation10 + $0x18] sm:$0xff]  ;;  %v866_v28 = vld [vmem:[#allocation10 + $0x10] sm:$0xff] }
 0x2fa   :  { %1226 = vmatprep.mubr.f32.mxu1 %v494_v30  ;;  %v495_v61 = vmul.f32 %v493_v31, %v487_v29  ;;  %v865_v30 = vld [vmem:[#allocation10 + $0x8] sm:$0xff]  ;;  %v864_v29 = vld [vmem:[#allocation10] sm:$0xff] }
 0x2fc   :  { %1227 = vmatmul.mubr.f32.vlgmr.msra.gmra.mxu1 %v495_v61 }
 0x2fd   :  { %1265 = vmatpush3.msra.mxu1 %v1600_v5  ;;  %1296 = vmatprep.mubr.msk.f32.mxu1 %vm1517_vm1, %v1516_v0  ;;  %v987_v5 = vld [vmem:[%s1838_s4] ss:$0 sm:$0xff] }
 0x2fe   :  { %1266 = vmatprep.subr.mxu1 %v1516_v0 }
 0x2ff   :  { %1267 = vmatpush3.msra.mxu1 %v1602_v6 }
 0x300   :  { %1268 = vmatprep.subr.mxu1 %v1516_v0 }
 0x301   :  { %1269 = vmatpush3.msra.mxu1 %v1606_v8 }
 0x302   :  { %1270 = vmatprep.subr.mxu1 %v1516_v0 }
 0x303   :  { %1271 = vmatpush3.msra.mxu1 %v1610_v10 }
 0x304   :  { %1272 = vmatprep.subr.mxu1 %v1516_v0 }
 0x305   :  { %1273 = vmatpush3.msra.mxu1 %v1614_v12 }
 0x306   :  { %1274 = vmatprep.subr.mxu1 %v1516_v0 }
 0x307   :  { %1275 = vmatpush3.msra.mxu1 %v1618_v14 }
 0x308   :  { %1276 = vmatprep.subr.mxu1 %v1516_v0 }
 0x309   :  { %1277 = vmatpush3.msra.mxu1 %v1622_v16 }
 0x30a   :  { %1278 = vmatprep.subr.mxu1 %v1516_v0 }
 0x30b   :  { %1279 = vmatpush3.msra.mxu1 %v1644_v18 }
 0x30c   :  { %1280 = vmatprep.subr.mxu1 %v1516_v0 }
 0x30d   :  { %1281 = vmatpush3.msra.mxu1 %v1649_v19 }
 0x30e   :  { %1282 = vmatprep.subr.mxu1 %v1516_v0 }
 0x30f   :  { %1283 = vmatpush3.msra.mxu1 %v1655_v20 }
 0x310   :  { %1284 = vmatprep.subr.mxu1 %v1516_v0 }
 0x311   :  { %1285 = vmatpush3.msra.mxu1 %v1661_v21 }
 0x312   :  { %1286 = vmatprep.subr.mxu1 %v1516_v0 }
 0x313   :  { %1287 = vmatpush3.msra.mxu1 %v1667_v22 }
 0x314   :  { %1288 = vmatprep.subr.mxu1 %v1516_v0 }
 0x315   :  { %1289 = vmatpush3.msra.mxu1 %v1673_v23 }
 0x316   :  { %1290 = vmatprep.subr.mxu1 %v1516_v0 }
 0x317   :  { %1291 = vmatpush3.msra.mxu1 %v1677_v24 }
 0x318   :  { %1292 = vmatprep.subr.mxu1 %v1516_v0 }
 0x319   :  { %1293 = vmatpush3.msra.mxu1 %v1681_v25 }
 0x31a   :  { %1294 = vmatprep.subr.mxu1 %v1516_v0 }
 0x31b   :  { %1295 = vmatpush3.msra.mxu1 %v1688_v26 }
 0x3bc   :  { %v1228_v6 = vpop.f32.mrf.mxu1 }
 0x3bd   :  { %v589_v8 = vadd.f32 %v1228_v6, %v987_v5 }
 0x3be   :  { %v583_v10 = vpop.f32.mrf.mxu1 }
 0x3bf   :  { %v600_v12 = vrot.slane %v589_v8, 4  ;;  %v584_v14 = vadd.f32 %v987_v5, %v583_v10 }
 0x3c1   :  { %v601_v16 = vadd.f32 %v600_v12, %v589_v8  ;;  %v594_v18 = vrot.slane %v584_v14, 4 }
 0x3c3   :  { %v602_v19 = vrot.slane %v601_v16, 2  ;;  %v595_v20 = vadd.f32 %v594_v18, %v584_v14 }
 0x3c5   :  { %v603_v21 = vadd.f32 %v602_v19, %v601_v16  ;;  %v596_v22 = vrot.slane %v595_v20, 2  ;;  %v988_v19 = vld [vmem:[%s1838_s4 + $0x1] ss:$0 sm:$0xff] }
 0x3c7   :  { %v604_v23 = vrot.slane %v603_v21, 1  ;;  %v597_v24 = vadd.f32 %v596_v22, %v595_v20  ;;  %v989_v22 = vld [vmem:[%s1838_s4 + $0x2] ss:$0 sm:$0xff] }
 0x3c9   :  { %v598_v0 = vrot.slane %v597_v24, 1  ;;  %v605_v26 = vadd.f32 %v604_v23, %v603_v21 }
 0x3cb   :  { %v599_v25 = vadd.f32 %v598_v0, %v597_v24 }
 0x3cd   :  { %v608_v62 = vsel %vm239_vm2, %v605_v26, %v599_v25 }
 0x3ce   :  { %1262 = vmatmul.mubr.f32.vlgmr.msra.gmra.mxu0 %v608_v62 }
 0x3cf   :  { %1300 = vmatpush3.msra.mxu0 %v879_v60 }
 0x3d0   :  { %1301 = vmatprep.subr.mxu0 %v878_v63 }
 0x3d1   :  { %1302 = vmatpush3.msra.mxu0 %v878_v63 }
 0x3d2   :  { %1303 = vmatprep.subr.mxu0 %v877_v1 }
 0x3d3   :  { %1304 = vmatpush3.msra.mxu0 %v877_v1 }
 0x3d4   :  { %1305 = vmatprep.subr.mxu0 %v876_v2 }
 0x3d5   :  { %1306 = vmatpush3.msra.mxu0 %v876_v2 }
 0x3d6   :  { %1307 = vmatprep.subr.mxu0 %v875_v3 }
 0x3d7   :  { %1308 = vmatpush3.msra.mxu0 %v875_v3 }
 0x3d8   :  { %1309 = vmatprep.subr.mxu0 %v874_v4 }
 0x3d9   :  { %1310 = vmatpush3.msra.mxu0 %v874_v4 }
 0x3da   :  { %1311 = vmatprep.subr.mxu0 %v873_v7 }
 0x3db   :  { %1312 = vmatpush3.msra.mxu0 %v873_v7 }
 0x3dc   :  { %1313 = vmatprep.subr.mxu0 %v872_v9 }
 0x3dd   :  { %1314 = vmatpush3.msra.mxu0 %v872_v9 }
 0x3de   :  { %1315 = vmatprep.subr.mxu0 %v871_v11 }
 0x3df   :  { %1316 = vmatpush3.msra.mxu0 %v871_v11 }
 0x3e0   :  { %1317 = vmatprep.subr.mxu0 %v870_v13 }
 0x3e1   :  { %1318 = vmatpush3.msra.mxu0 %v870_v13 }
 0x3e2   :  { %1319 = vmatprep.subr.mxu0 %v869_v15 }
 0x3e3   :  { %1320 = vmatpush3.msra.mxu0 %v869_v15 }
 0x3e4   :  { %1321 = vmatprep.subr.mxu0 %v868_v17 }
 0x3e5   :  { %1322 = vmatpush3.msra.mxu0 %v868_v17 }
 0x3e6   :  { %1323 = vmatprep.subr.mxu0 %v867_v27 }
 0x3e7   :  { %1324 = vmatpush3.msra.mxu0 %v867_v27 }
 0x3e8   :  { %1325 = vmatprep.subr.mxu0 %v866_v28 }
 0x3e9   :  { %1326 = vmatpush3.msra.mxu0 %v866_v28 }
 0x3ea   :  { %1327 = vmatprep.subr.mxu0 %v865_v30 }
 0x3eb   :  { %1328 = vmatpush3.msra.mxu0 %v865_v30 }
 0x3ec   :  { %1329 = vmatprep.subr.mxu0 %v864_v29 }
 0x3ed   :  { %1330 = vmatpush3.msra.mxu0 %v864_v29 }
 0x48e   :  { %v676_v32 = vpop.f32.mrf.mxu0 }
 0x48f   :  { %v680_v33 = vmul.f32 0.0625, %v676_v32 }
 0x490   :  { %v1263_v34 = vpop.f32.mrf.mxu0 }
 0x491   :  { %v688_v35 = vrot.slane %v680_v33, %v1702_v50 }
 0x493   :  { %v689_v36 = vcombine.high %v688_v35, %v688_v35  ;;  %v696_v37 = vrot.slane %v688_v35, %v1702_v50 }
 0x495   :  { %v703_v38 = vrot.slane %v689_v36, %v1702_v50  ;;  %v707_v39 = vrot.slane %v696_v37, %v1705_v55 }
 0x497   :  { %v711_v40 = vrot.slane %v703_v38, %v1705_v55  ;;  %v1803_v41 = vsub.f32 %v584_v14, %v707_v39  ;;  %v990_v39 = vld [vmem:[%s1840_s6] ss:$0 sm:$0xff] }
 0x499   :  { %v1805_v42 = vsub.f32 %v589_v8, %v711_v40  ;;  %v716_v43 = vmul.f32 %v1803_v41, %v1803_v41 }
 0x49b   :  { %v717_v44 = vmul.f32 %v1805_v42, %v1805_v42  ;;  %v718_v45 = vrot.slane %v716_v43, 4 }
 0x49d   :  { %v719_v46 = vadd.f32 %v718_v45, %v716_v43  ;;  %v724_v47 = vrot.slane %v717_v44, 4 }
 0x49f   :  { %v720_v48 = vrot.slane %v719_v46, 2  ;;  %v725_v49 = vadd.f32 %v724_v47, %v717_v44 }
 0x4a1   :  { %v721_v51 = vadd.f32 %v720_v48, %v719_v46  ;;  %v726_v52 = vrot.slane %v725_v49, 2 }
 0x4a3   :  { %v722_v53 = vrot.slane %v721_v51, 1  ;;  %v727_v54 = vadd.f32 %v726_v52, %v725_v49 }
 0x4a5   :  { %v728_v56 = vrot.slane %v727_v54, 1  ;;  %v723_v57 = vadd.f32 %v722_v53, %v721_v51 }
 0x4a7   :  { %v729_v58 = vadd.f32 %v728_v56, %v727_v54 }
 0x4a9   :  { %v732_v59 = vsel %vm239_vm2, %v729_v58, %v723_v57 }
 0x4aa   :  { %1297 = vmatmul.mubr.f32.vlgmr.msra.gmra.mxu1 %v732_v59 }
 0x56a   :  { %v800_v31 = vpop.f32.mrf.mxu1 }
 0x56b   :  { %v804_v61 = vmul.f32 0.0625, %v800_v31 }
 0x56c   :  { %v1298_v5 = vpop.f32.mrf.mxu1 }
 0x56d   :  { %v805_v6 = vadd.f32 1e-05, %v804_v61 }
 0x56f   :  { %1352 = vrsqrt.f32 %v805_v6 }
 0x57c   :  { %v1353_v8 = vpop.eup %1352 }
 0x57d   :  { %v814_v10 = vrot.slane %v1353_v8, %v1702_v50 }
 0x57f   :  { %v815_v12 = vcombine.high %v814_v10, %v814_v10  ;;  %v822_v14 = vrot.slane %v814_v10, %v1702_v50 }
 0x581   :  { %v829_v16 = vrot.slane %v815_v12, %v1702_v50  ;;  %v833_v18 = vrot.slane %v822_v14, %v1705_v55 }
 0x583   :  { %v837_v20 = vrot.slane %v829_v16, %v1705_v55  ;;  %v840_v21 = vmul.f32 %v833_v18, %v1803_v41 }
 0x585   :  { %v841_v23 = vmul.f32 %v837_v20, %v1805_v42  ;;  %v846_v24 = vmul.f32 %v988_v19, %v840_v21 }
 0x587   :  { %v847_v0 = vmul.f32 %v988_v19, %v841_v23  ;;  %v852_v25 = vadd.f32 %v989_v22, %v846_v24 }
 0x589   :  { %v853_v50 = vadd.f32 %v989_v22, %v847_v0  ;;  %v856_v26 = vmul.f32 0.70710677, %v852_v25  ;;  %v854_v33 = vmul.f32 0.5, %v852_v25 }
 0x58b   :  { %v857_v62 = vmul.f32 0.70710677, %v853_v50  ;;  %1354 = verf.f32 %v856_v26  ;;  %v855_v36 = vmul.f32 0.5, %v853_v50 }
 0x58d   :  { %1356 = verf.f32 %v857_v62 }
 0x598   :  { %v1355_v32 = vpop.eup %1354 }
 0x599   :  { %v860_v34 = vadd.f32 1.0, %v1355_v32 }
 0x59a   :  { %v1357_v55 = vpop.eup %1356 }
 0x59b   :  { %v862_v35 = vmul.f32 %v860_v34, %v854_v33  ;;  %v861_v37 = vadd.f32 1.0, %v1357_v55 }
 0x59d   :  { %1331 = vmatprep.mubr.f32.mxu0 %v862_v35  ;;  %v863_v38 = vmul.f32 %v861_v37, %v855_v36 }
 0x59f   :  { %1332 = vmatmul.mubr.f32.vlgmr.msra.gmra.mxu0 %v863_v38 }
 0x65f   :  { %v1333_v40 = vpop.f32.mrf.mxu0 }
 0x660   :  { %v957_v41 = vadd.f32 %v1333_v40, %v990_v39 }
 0x661   :  { %v951_v42 = vpop.f32.mrf.mxu0 }
 0x662   :  { %961 = vst [vmem:[#allocation13 + $0x8] sm:$0xff] %v957_v41  ;;  %v952_v43 = vadd.f32 %v990_v39, %v951_v42 }
 0x664   :  { %960 = vst [vmem:[#allocation13] sm:$0xff] %v952_v43 }
 0x665   :  { %1489 = shalt.err (!%p1486_p6)
}
 0x666   :  { %973 = dma.vmem_to_hbm [thread:$0]  %s968_s19, 256, %s1842_s8, [#allocation4], %s1510_s10, %s1510_s10, %s1511_s11  }
 0x667   :  { %1506 = dma.done.wait [#allocation4], 256  }
 0x668   :  { %1507 = vsyncadd [#allocation4], 4294967040 }
 0x669   :  { %977 = vsyncpa [#allocation3], 1 }
 0x66a   :  { %978 = vsyncpa [#allocation6], 1 }
 0x66b   :  { %979 = vsyncpa [#allocation9], 1 }
 0x66c   :  { %980 = vsyncpa [#allocation12], 1 }
 0x66d   :  { %981 = vsyncpa [#allocation4], 1 }

// kernel: tpu_custom_call.1
= control target key start
LH: loop header
LB: loop body
LE: loop exit
PB: predicated region body
PF: predicated region fallthrough
CT: control target
= control target key end

     0   :  { %13 = vsyncpa [#allocation3], 0  ;;  %s1834_s0 = inlined_call_operand.hbm [shape: f32[2,8,64], index: 0, kind: input, shape index: {}]   ;;  %s1835_s1 = inlined_call_operand.hbm [shape: f32[64,128], index: 1, kind: input, shape index: {}]   ;;  %s1836_s2 = inlined_call_operand.hbm [shape: f32[3,128], index: 2, kind: input, shape index: {}]   ;;  %s1837_s3 = inlined_call_operand.hbm [shape: f32[128,128], index: 3, kind: input, shape index: {}]   ;;  %s1838_s4 = inlined_call_operand.vmem [shape: f32[3,128], index: 4, kind: input, shape index: {}]   ;;  %s1839_s5 = inlined_call_operand.hbm [shape: f32[128,128], index: 5, kind: input, shape index: {}]   ;;  %s1840_s6 = inlined_call_operand.vmem [shape: f32[3,128], index: 6, kind: input, shape index: {}]   ;;  %s1841_s7 = inlined_call_operand.hbm [shape: f32[128,128], index: 7, kind: input, shape index: {}]   ;;  %s1842_s8 = inlined_call_operand.hbm [shape: f32[2,8,128], index: 8, kind: output, shape index: {}]  }
   0x1   :  { %14 = vsyncpa [#allocation6], 0 }
   0x2   :  { %15 = vsyncpa [#allocation9], 0 }
   0x3   :  { %16 = vsyncpa [#allocation12], 0 }
   0x4   :  { %17 = vsyncpa [#allocation4], 0  ;;  %s1508_s27 = smov [#allocation5]   ;;  %s1509_s29 = smov [#allocation8]  }
   0x5   :  { %s35_s28 = sshll.u32 %s1508_s27, 4  ;;  %s57_s30 = sshll.u32 %s1509_s29, 4  ;;  %s36_s28 = int_to_ptr.vmem [resolvable:$true] %s35_s28  ;;  %s58_s30 = int_to_ptr.vmem [resolvable:$true] %s57_s30 }
   0x6   :  { %s1366_s9 = scalar_lea.vmem %s36_s28, 1024  ;;  %p1371_p1 = scmp.lt.s32.totalorder %s36_s28, %s36_s28 }
   0x7   :  { %p1367_p0 = scmp.ne.s32.totalorder %s36_s28, %s1366_s9  ;;  %p1372_p2 = scmp.lt.s32.totalorder %s1366_s9, %s1366_s9 }
   0x9   :  { %p1373_p3 = por %p1372_p2, %p1371_p1 }
   0xb   :  { %p1374_p4 = pnand %p1373_p3, %p1367_p0 }
   0xd   :  { %1377 = shalt.err (!%p1374_p4)
}
   0xe   :  { %s1510_s10 = smov 128   ;;  %s1511_s11 = smov 8  }
   0xf   :  { %41 = dma.hbm_to_vmem [thread:$0]  %s1835_s1, 1024, %s36_s28, [#allocation6], %s1510_s10, %s1510_s10, %s1511_s11  }
  0x10   :  { %s1386_s14 = scalar_lea.vmem %s58_s30, 2048  ;;  %p1391_p6 = scmp.lt.s32.totalorder %s58_s30, %s58_s30 }
  0x11   :  { %p1387_p5 = scmp.ne.s32.totalorder %s58_s30, %s1386_s14  ;;  %p1392_p7 = scmp.lt.s32.totalorder %s1386_s14, %s1386_s14 }
  0x13   :  { %p1393_p8 = por %p1392_p7, %p1391_p6 }
  0x15   :  { %p1394_p9 = pnand %p1393_p8, %p1387_p5 }
  0x17   :  { %1397 = shalt.err (!%p1394_p9)
}
  0x18   :  { %63 = dma.hbm_to_vmem [thread:$0]  %s1837_s3, 2048, %s58_s30, [#allocation9], %s1510_s10, %s1510_s10, %s1511_s11  }
  0x19   :  { %s1512_s17 = smov [#allocation2]   ;;  %s1513_s19 = smov [#allocation7]  }
  0x1a   :  { %s23_s18 = sshll.u32 %s1512_s17, 4  ;;  %s48_s20 = sshll.u32 %s1513_s19, 4  ;;  %s24_s18 = int_to_ptr.vmem [resolvable:$true] %s23_s18  ;;  %s49_s20 = int_to_ptr.vmem [resolvable:$true] %s48_s20 }
  0x1b   :  { %s1406_s1 = scalar_lea.vmem %s24_s18, 256  ;;  %p1411_p11 = scmp.lt.s32.totalorder %s24_s18, %s24_s18 }
  0x1c   :  { %p1407_p10 = scmp.ne.s32.totalorder %s24_s18, %s1406_s1  ;;  %p1412_p12 = scmp.lt.s32.totalorder %s1406_s1, %s1406_s1 }
  0x1e   :  { %p1413_p13 = por %p1412_p12, %p1411_p11 }
  0x20   :  { %p1414_p0 = pnand %p1413_p13, %p1407_p10 }
  0x22   :  { %1417 = shalt.err (!%p1414_p0)
}
  0x23   :  { %29 = dma.hbm_to_vmem [thread:$0]  %s1834_s0, 256, %s24_s18, [#allocation3], %s1510_s10, %s1510_s10, %s1511_s11  }
  0x24   :  { %s1426_s3 = scalar_lea.vmem %s49_s20, 64  ;;  %p1431_p2 = scmp.lt.s32.totalorder %s49_s20, %s49_s20 }
  0x25   :  { %p1427_p1 = scmp.ne.s32.totalorder %s49_s20, %s1426_s3  ;;  %p1432_p3 = scmp.lt.s32.totalorder %s1426_s3, %s1426_s3 }
  0x27   :  { %p1433_p4 = por %p1432_p3, %p1431_p2 }
  0x29   :  { %p1434_p5 = pnand %p1433_p4, %p1427_p1 }
  0x2b   :  { %1437 = shalt.err (!%p1434_p5)
}
  0x2c   :  { %51 = dma.hbm_to_vmem [thread:$0]  %s1836_s2, 64, %s49_s20, [#allocation6]  }
  0x2d   :  { %s1514_s25 = smov [#allocation10]   ;;  %s1515_s27 = smov [#allocation11]  }
  0x2e   :  { %s71_s26 = sshll.u32 %s1514_s25, 4  ;;  %s85_s28 = sshll.u32 %s1515_s27, 4  ;;  %s72_s26 = int_to_ptr.vmem [resolvable:$true] %s71_s26  ;;  %s86_s28 = int_to_ptr.vmem [resolvable:$true] %s85_s28 }
  0x2f   :  { %s1446_s29 = scalar_lea.vmem %s72_s26, 2048  ;;  %p1451_p7 = scmp.lt.s32.totalorder %s72_s26, %s72_s26 }
  0x30   :  { %p1447_p6 = scmp.ne.s32.totalorder %s72_s26, %s1446_s29  ;;  %p1452_p8 = scmp.lt.s32.totalorder %s1446_s29, %s1446_s29 }
  0x32   :  { %p1453_p9 = por %p1452_p8, %p1451_p7 }
  0x34   :  { %p1454_p10 = pnand %p1453_p9, %p1447_p6 }
  0x36   :  { %1457 = shalt.err (!%p1454_p10)
}
  0x37   :  { %77 = dma.hbm_to_vmem [thread:$0]  %s1839_s5, 2048, %s72_s26, [#allocation9], %s1510_s10, %s1510_s10, %s1511_s11  }
  0x38   :  { %s1466_s2 = scalar_lea.vmem %s86_s28, 2048  ;;  %p1471_p12 = scmp.lt.s32.totalorder %s86_s28, %s86_s28 }
  0x39   :  { %p1467_p11 = scmp.ne.s32.totalorder %s86_s28, %s1466_s2  ;;  %p1472_p13 = scmp.lt.s32.totalorder %s1466_s2, %s1466_s2 }
  0x3b   :  { %p1473_p0 = por %p1472_p13, %p1471_p12 }
  0x3d   :  { %p1474_p1 = pnand %p1473_p0, %p1467_p11 }
  0x3f   :  { %1477 = shalt.err (!%p1474_p1)
}
  0x40   :  { %91 = dma.hbm_to_vmem [thread:$0]  %s1841_s7, 2048, %s86_s28, [#allocation12], %s1510_s10, %s1510_s10, %s1511_s11  }
  0x41   :  { %1498 = dma.done.wait [#allocation3], 256  }
  0x42   :  { %1499 = vsyncadd [#allocation3], 4294967040 }
  0x43   :  { %1500 = dma.done.wait [#allocation6], 1088  }
  0x44   :  { %1501 = vsyncadd [#allocation6], 4294966208 }
  0x45   :  { %1502 = dma.done.wait [#allocation9], 4096  }
  0x46   :  { %1503 = vsyncadd [#allocation9], 4294963200 }
  0x47   :  { %1504 = dma.done.wait [#allocation12], 2048  }
  0x48   :  { %1505 = vsyncadd [#allocation12], 4294965248  ;;  %v1516_v0 = vmov 0.0   ;;  %v119_v1 = vld [vmem:[#allocation5 + $0x38] sm:$0xff]  ;;  %v118_v2 = vld [vmem:[#allocation5 + $0x30] sm:$0xff]  ;;  %vm125_vm0 = vcmask 523264   ;;  %v317_v47 = vlaneseq }
  0x49   :  { %1124 = vmatprep.subr.mxu1 %v1516_v0  ;;  %1105 = vmatprep.subr.mxu0 %v119_v1  ;;  %v117_v3 = vld [vmem:[#allocation5 + $0x28] sm:$0xff]  ;;  %v110_v4 = vld [vmem:[#allocation2] sm:$0xff]  ;;  %v1600_v5 = vld [vmem:[#allocation11 + $0x78] sm:$0xff]  ;;  %vm1517_vm1 = vmmov 0   ;;  %vm239_vm2 = vcmask 1041409   ;;  %s1519_s18 = smov [#allocation13]  }
  0x4a   :  { %1106 = vmatpush3.msra.mxu0 %v119_v1  ;;  %1121 = vmatprep.mubr.msk.f32.mxu0 %vm125_vm0, %v110_v4  ;;  %v1602_v6 = vld [vmem:[#allocation11 + $0x70] sm:$0xff]  ;;  %v116_v7 = vld [vmem:[#allocation5 + $0x20] sm:$0xff]  ;;  %v1606_v8 = vld [vmem:[#allocation11 + $0x68] sm:$0xff]  ;;  %v1518_v45 = vmov 1966171168   ;;  %v318_v49 = vshrl.u32 %v317_v47, 7 }
  0x4b   :  { %1107 = vmatprep.subr.mxu0 %v118_v2  ;;  %1125 = vmatpush3.msra.mxu1 %v1600_v5  ;;  %v115_v9 = vld [vmem:[#allocation5 + $0x18] sm:$0xff]  ;;  %v1610_v10 = vld [vmem:[#allocation11 + $0x60] sm:$0xff]  ;;  %v114_v11 = vld [vmem:[#allocation5 + $0x10] sm:$0xff]  ;;  %v315_v46 = vunpack.c.l.s4 %v1518_v45  ;;  %s967_s19 = sshll.u32 %s1519_s18, 4  ;;  %s968_s19 = int_to_ptr.vmem [resolvable:$true] %s967_s19 }
  0x4c   :  { %1108 = vmatpush3.msra.mxu0 %v118_v2  ;;  %1126 = vmatprep.subr.mxu1 %v1516_v0  ;;  %v1614_v12 = vld [vmem:[#allocation11 + $0x58] sm:$0xff]  ;;  %v113_v13 = vld [vmem:[#allocation5 + $0x8] sm:$0xff]  ;;  %v1618_v14 = vld [vmem:[#allocation11 + $0x50] sm:$0xff]  ;;  %v1705_v55 = vsub.s32 0, %v318_v49  ;;  %s1478_s20 = scalar_lea.vmem %s968_s19, 256  ;;  %p1483_p3 = scmp.lt.s32.totalorder %s968_s19, %s968_s19 }
  0x4d   :  { %1109 = vmatprep.subr.mxu0 %v117_v3  ;;  %1127 = vmatpush3.msra.mxu1 %v1602_v6  ;;  %v112_v15 = vld [vmem:[#allocation5] sm:$0xff]  ;;  %v1622_v16 = vld [vmem:[#allocation11 + $0x48] sm:$0xff]  ;;  %v111_v17 = vld [vmem:[#allocation2 + $0x8] sm:$0xff]  ;;  %v316_v48 = vunpack.c.0.s8 %v315_v46  ;;  %p1479_p2 = scmp.ne.s32.totalorder %s968_s19, %s1478_s20  ;;  %p1484_p4 = scmp.lt.s32.totalorder %s1478_s20, %s1478_s20 }
  0x4e   :  { %1110 = vmatpush3.msra.mxu0 %v117_v3  ;;  %1128 = vmatprep.subr.mxu1 %v1516_v0  ;;  %v1644_v18 = vld [vmem:[#allocation11 + $0x40] sm:$0xff]  ;;  %v1649_v19 = vld [vmem:[#allocation11 + $0x38] sm:$0xff]  ;;  %v1655_v20 = vld [vmem:[#allocation11 + $0x30] sm:$0xff] }
  0x4f   :  { %1111 = vmatprep.subr.mxu0 %v116_v7  ;;  %1129 = vmatpush3.msra.mxu1 %v1606_v8  ;;  %v1661_v21 = vld [vmem:[#allocation11 + $0x28] sm:$0xff]  ;;  %v1667_v22 = vld [vmem:[#allocation11 + $0x20] sm:$0xff]  ;;  %v1673_v23 = vld [vmem:[#allocation11 + $0x18] sm:$0xff]  ;;  %v1702_v50 = vsub.s32 %v316_v48, %v318_v49  ;;  %p1485_p5 = por %p1484_p4, %p1483_p3 }
  0x50   :  { %1112 = vmatpush3.msra.mxu0 %v116_v7  ;;  %1130 = vmatprep.subr.mxu1 %v1516_v0  ;;  %v1677_v24 = vld [vmem:[#allocation11 + $0x10] sm:$0xff]  ;;  %v1681_v25 = vld [vmem:[#allocation11 + $0x8] sm:$0xff]  ;;  %v1688_v26 = vld [vmem:[#allocation11] sm:$0xff] }
  0x51   :  { %1113 = vmatprep.subr.mxu0 %v115_v9  ;;  %1131 = vmatpush3.msra.mxu1 %v1610_v10  ;;  %v982_v27 = vld [vmem:[#allocation7] ss:$0 sm:$0xff]  ;;  %v497_v45 = vld [vmem:[#allocation8 + $0x8] sm:$0xff]  ;;  %v496_v46 = vld [vmem:[#allocation8] sm:$0xff]  ;;  %p1486_p6 = pnand %p1485_p5, %p1479_p2 }
  0x52   :  { %1114 = vmatpush3.msra.mxu0 %v115_v9  ;;  %1132 = vmatprep.subr.mxu1 %v1516_v0 }
  0x53   :  { %1115 = vmatprep.subr.mxu0 %v114_v11  ;;  %1133 = vmatpush3.msra.mxu1 %v1614_v12 }
  0x54   :  { %1116 = vmatpush3.msra.mxu0 %v114_v11  ;;  %1134 = vmatprep.subr.mxu1 %v1516_v0 }
  0x55   :  { %1117 = vmatprep.subr.mxu0 %v113_v13  ;;  %1135 = vmatpush3.msra.mxu1 %v1618_v14 }
  0x56   :  { %1118 = vmatpush3.msra.mxu0 %v113_v13  ;;  %1136 = vmatprep.subr.mxu1 %v1516_v0 }
  0x57   :  { %1119 = vmatprep.subr.mxu0 %v112_v15  ;;  %1137 = vmatpush3.msra.mxu1 %v1622_v16 }
  0x58   :  { %1120 = vmatpush3.msra.mxu0 %v112_v15  ;;  %1138 = vmatprep.subr.mxu1 %v1516_v0 }
  0x59   :  { %1122 = vmatmul.mubr.msk.f32.vlgmr.msra.gmra.mxu0 %vm125_vm0, %v111_v17  ;;  %1159 = vmatprep.subr.mxu0 %v1516_v0 }
  0x5a   :  { %1160 = vmatpush3.msra.mxu0 %v1600_v5  ;;  %1139 = vmatpush3.msra.mxu1 %v1644_v18 }
  0x5b   :  { %1161 = vmatprep.subr.mxu0 %v1516_v0  ;;  %1140 = vmatprep.subr.mxu1 %v1516_v0 }
  0x5c   :  { %1162 = vmatpush3.msra.mxu0 %v1602_v6  ;;  %1141 = vmatpush3.msra.mxu1 %v1649_v19 }
  0x5d   :  { %1163 = vmatprep.subr.mxu0 %v1516_v0  ;;  %1142 = vmatprep.subr.mxu1 %v1516_v0 }
  0x5e   :  { %1164 = vmatpush3.msra.mxu0 %v1606_v8  ;;  %1143 = vmatpush3.msra.mxu1 %v1655_v20 }
  0x5f   :  { %1165 = vmatprep.subr.mxu0 %v1516_v0  ;;  %1144 = vmatprep.subr.mxu1 %v1516_v0 }
  0x60   :  { %1166 = vmatpush3.msra.mxu0 %v1610_v10  ;;  %1145 = vmatpush3.msra.mxu1 %v1661_v21 }
  0x61   :  { %1167 = vmatprep.subr.mxu0 %v1516_v0  ;;  %1146 = vmatprep.subr.mxu1 %v1516_v0 }
  0x62   :  { %1168 = vmatpush3.msra.mxu0 %v1614_v12  ;;  %1147 = vmatpush3.msra.mxu1 %v1667_v22 }
  0x63   :  { %1169 = vmatprep.subr.mxu0 %v1516_v0  ;;  %1148 = vmatprep.subr.mxu1 %v1516_v0 }
  0x64   :  { %1170 = vmatpush3.msra.mxu0 %v1618_v14  ;;  %1149 = vmatpush3.msra.mxu1 %v1673_v23 }
  0x65   :  { %1171 = vmatprep.subr.mxu0 %v1516_v0  ;;  %1150 = vmatprep.subr.mxu1 %v1516_v0 }
  0x66   :  { %1172 = vmatpush3.msra.mxu0 %v1622_v16  ;;  %1156 = vmatprep.mubr.msk.f32.mxu1 %vm1517_vm1, %v1516_v0 }
  0x67   :  { %1173 = vmatprep.subr.mxu0 %v1516_v0  ;;  %1151 = vmatpush3.msra.mxu1 %v1677_v24 }
  0x68   :  { %1174 = vmatpush3.msra.mxu0 %v1644_v18  ;;  %1152 = vmatprep.subr.mxu1 %v1516_v0 }
  0x69   :  { %1175 = vmatprep.subr.mxu0 %v1516_v0  ;;  %1153 = vmatpush3.msra.mxu1 %v1681_v25 }
  0x6a   :  { %1176 = vmatpush3.msra.mxu0 %v1649_v19  ;;  %1154 = vmatprep.subr.mxu1 %v1516_v0 }
  0x6b   :  { %1177 = vmatprep.subr.mxu0 %v1516_v0  ;;  %1155 = vmatpush3.msra.mxu1 %v1688_v26 }
  0x6c   :  { %1178 = vmatpush3.msra.mxu0 %v1655_v20  ;;  %1191 = vmatprep.mubr.msk.f32.mxu0 %vm1517_vm1, %v1516_v0 }
  0x6d   :  { %1179 = vmatprep.subr.mxu0 %v1516_v0 }
  0x6e   :  { %1180 = vmatpush3.msra.mxu0 %v1661_v21 }
  0x6f   :  { %1181 = vmatprep.subr.mxu0 %v1516_v0 }
  0x70   :  { %1182 = vmatpush3.msra.mxu0 %v1667_v22 }
  0x71   :  { %1183 = vmatprep.subr.mxu0 %v1516_v0 }
  0x72   :  { %1184 = vmatpush3.msra.mxu0 %v1673_v23 }
  0x73   :  { %1185 = vmatprep.subr.mxu0 %v1516_v0 }
  0x74   :  { %1186 = vmatpush3.msra.mxu0 %v1677_v24 }
  0x75   :  { %1187 = vmatprep.subr.mxu0 %v1516_v0 }
  0x76   :  { %1188 = vmatpush3.msra.mxu0 %v1681_v25 }
  0x77   :  { %1189 = vmatprep.subr.mxu0 %v1516_v0 }
  0x78   :  { %1190 = vmatpush3.msra.mxu0 %v1688_v26 }
  0x79   :  { %1229 = vmatprep.subr.mxu0 %v1516_v0 }
 0x119   :  { %v1123_v28 = vpop.f32.mrf.mxu0 }
 0x11a   :  { %v204_v29 = vadd.f32 %v1123_v28, %v982_v27 }
 0x11b   :  { %v198_v30 = vpop.f32.mrf.mxu0 }
 0x11c   :  { %v231_v31 = vrot.slane %v204_v29, 4  ;;  %v199_v32 = vadd.f32 %v982_v27, %v198_v30 }
 0x11e   :  { %v232_v33 = vadd.f32 %v231_v31, %v204_v29  ;;  %v225_v34 = vrot.slane %v199_v32, 4  ;;  %v511_v31 = vld [vmem:[#allocation8 + $0x78] sm:$0xff] }
 0x11f   :  { %1194 = vmatprep.subr.mxu1 %v511_v31 }
 0x120   :  { %v233_v35 = vrot.slane %v232_v33, 2  ;;  %v226_v36 = vadd.f32 %v225_v34, %v199_v32  ;;  %v508_v34 = vld [vmem:[#allocation8 + $0x60] sm:$0xff] }
 0x122   :  { %v234_v37 = vadd.f32 %v233_v35, %v232_v33  ;;  %v227_v38 = vrot.slane %v226_v36, 2  ;;  %v509_v33 = vld [vmem:[#allocation8 + $0x68] sm:$0xff]  ;;  %v507_v35 = vld [vmem:[#allocation8 + $0x58] sm:$0xff] }
 0x124   :  { %v228_v39 = vadd.f32 %v227_v38, %v226_v36  ;;  %v235_v40 = vrot.slane %v234_v37, 1  ;;  %v506_v36 = vld [vmem:[#allocation8 + $0x50] sm:$0xff]  ;;  %v504_v38 = vld [vmem:[#allocation8 + $0x40] sm:$0xff] }
 0x126   :  { %v229_v41 = vrot.slane %v228_v39, 1  ;;  %v236_v43 = vadd.f32 %v235_v40, %v234_v37  ;;  %v505_v37 = vld [vmem:[#allocation8 + $0x48] sm:$0xff]  ;;  %v502_v40 = vld [vmem:[#allocation8 + $0x30] sm:$0xff] }
 0x128   :  { %v230_v42 = vadd.f32 %v229_v41, %v228_v39  ;;  %v503_v39 = vld [vmem:[#allocation8 + $0x38] sm:$0xff]  ;;  %v501_v41 = vld [vmem:[#allocation8 + $0x28] sm:$0xff] }
 0x12a   :  { %v240_v44 = vsel %vm239_vm2, %v236_v43, %v230_v42  ;;  %v500_v42 = vld [vmem:[#allocation8 + $0x20] sm:$0xff]  ;;  %v499_v43 = vld [vmem:[#allocation8 + $0x18] sm:$0xff] }
 0x12b   :  { %1157 = vmatmul.mubr.f32.vlgmr.msra.gmra.mxu1 %v240_v44  ;;  %v498_v44 = vld [vmem:[#allocation8 + $0x10] sm:$0xff] }
 0x12c   :  { %1195 = vmatpush3.msra.mxu1 %v511_v31 }
 0x1eb   :  { %v308_v51 = vpop.f32.mrf.mxu1 }
 0x1ec   :  { %v312_v52 = vmul.f32 0.0625, %v308_v51 }
 0x1ed   :  { %v1158_v53 = vpop.f32.mrf.mxu1 }
 0x1ee   :  { %v320_v54 = vrot.slane %v312_v52, %v1702_v50 }
 0x1f0   :  { %v321_v56 = vcombine.high %v320_v54, %v320_v54  ;;  %v328_v57 = vrot.slane %v320_v54, %v1702_v50 }
 0x1f2   :  { %v335_v58 = vrot.slane %v321_v56, %v1702_v50  ;;  %v339_v59 = vrot.slane %v328_v57, %v1705_v55 }
 0x1f4   :  { %v343_v60 = vrot.slane %v335_v58, %v1705_v55  ;;  %v1711_v61 = vsub.f32 %v199_v32, %v339_v59  ;;  %v510_v32 = vld [vmem:[#allocation8 + $0x70] sm:$0xff]  ;;  %v985_v59 = vld [vmem:[#allocation7 + $0x1] ss:$0 sm:$0xff] }
 0x1f5   :  { %1196 = vmatprep.subr.mxu1 %v510_v32 }
 0x1f6   :  { %v1713_v62 = vsub.f32 %v204_v29, %v343_v60  ;;  %v348_v63 = vmul.f32 %v1711_v61, %v1711_v61  ;;  %1197 = vmatpush3.msra.mxu1 %v510_v32 }
 0x1f7   :  { %1198 = vmatprep.subr.mxu1 %v509_v33 }
 0x1f8   :  { %v349_v1 = vmul.f32 %v1713_v62, %v1713_v62  ;;  %v350_v2 = vrot.slane %v348_v63, 4  ;;  %1199 = vmatpush3.msra.mxu1 %v509_v33 }
 0x1f9   :  { %1200 = vmatprep.subr.mxu1 %v508_v34 }
 0x1fa   :  { %v351_v3 = vadd.f32 %v350_v2, %v348_v63  ;;  %v356_v4 = vrot.slane %v349_v1, 4  ;;  %1201 = vmatpush3.msra.mxu1 %v508_v34 }
 0x1fb   :  { %1202 = vmatprep.subr.mxu1 %v507_v35 }
 0x1fc   :  { %v352_v7 = vrot.slane %v351_v3, 2  ;;  %v357_v9 = vadd.f32 %v356_v4, %v349_v1  ;;  %1203 = vmatpush3.msra.mxu1 %v507_v35  ;;  %v986_v1 = vld [vmem:[#allocation7 + $0x2] ss:$0 sm:$0xff] }
 0x1fd   :  { %1204 = vmatprep.subr.mxu1 %v506_v36 }
 0x1fe   :  { %v353_v11 = vadd.f32 %v352_v7, %v351_v3  ;;  %v358_v13 = vrot.slane %v357_v9, 2  ;;  %1205 = vmatpush3.msra.mxu1 %v506_v36 }
 0x1ff   :  { %1206 = vmatprep.subr.mxu1 %v505_v37 }
 0x200   :  { %v354_v15 = vrot.slane %v353_v11, 1  ;;  %v359_v17 = vadd.f32 %v358_v13, %v357_v9  ;;  %1207 = vmatpush3.msra.mxu1 %v505_v37 }
 0x201   :  { %1208 = vmatprep.subr.mxu1 %v504_v38 }
 0x202   :  { %v360_v27 = vrot.slane %v359_v17, 1  ;;  %v355_v28 = vadd.f32 %v354_v15, %v353_v11  ;;  %1209 = vmatpush3.msra.mxu1 %v504_v38 }
 0x203   :  { %1210 = vmatprep.subr.mxu1 %v503_v39 }
 0x204   :  { %v361_v30 = vadd.f32 %v360_v27, %v359_v17  ;;  %1211 = vmatpush3.msra.mxu1 %v503_v39 }
 0x205   :  { %1212 = vmatprep.subr.mxu1 %v502_v40 }
 0x206   :  { %v364_v29 = vsel %vm239_vm2, %v361_v30, %v355_v28  ;;  %1213 = vmatpush3.msra.mxu1 %v502_v40 }
 0x207   :  { %1192 = vmatmul.mubr.f32.vlgmr.msra.gmra.mxu0 %v364_v29  ;;  %1214 = vmatprep.subr.mxu1 %v501_v41 }
 0x208   :  { %1230 = vmatpush3.msra.mxu0 %v1600_v5  ;;  %1261 = vmatprep.mubr.msk.f32.mxu0 %vm1517_vm1, %v1516_v0 }
 0x209   :  { %1231 = vmatprep.subr.mxu0 %v1516_v0  ;;  %1215 = vmatpush3.msra.mxu1 %v501_v41 }
 0x20a   :  { %1232 = vmatpush3.msra.mxu0 %v1602_v6  ;;  %1216 = vmatprep.subr.mxu1 %v500_v42 }
 0x20b   :  { %1233 = vmatprep.subr.mxu0 %v1516_v0  ;;  %1217 = vmatpush3.msra.mxu1 %v500_v42 }
 0x20c   :  { %1234 = vmatpush3.msra.mxu0 %v1606_v8  ;;  %1218 = vmatprep.subr.mxu1 %v499_v43 }
 0x20d   :  { %1235 = vmatprep.subr.mxu0 %v1516_v0  ;;  %1219 = vmatpush3.msra.mxu1 %v499_v43 }
 0x20e   :  { %1236 = vmatpush3.msra.mxu0 %v1610_v10  ;;  %1220 = vmatprep.subr.mxu1 %v498_v44 }
 0x20f   :  { %1237 = vmatprep.subr.mxu0 %v1516_v0  ;;  %1221 = vmatpush3.msra.mxu1 %v498_v44 }
 0x210   :  { %1238 = vmatpush3.msra.mxu0 %v1614_v12  ;;  %1222 = vmatprep.subr.mxu1 %v497_v45 }
 0x211   :  { %1239 = vmatprep.subr.mxu0 %v1516_v0  ;;  %1223 = vmatpush3.msra.mxu1 %v497_v45 }
 0x212   :  { %1240 = vmatpush3.msra.mxu0 %v1618_v14  ;;  %1224 = vmatprep.subr.mxu1 %v496_v46 }
 0x213   :  { %1241 = vmatprep.subr.mxu0 %v1516_v0  ;;  %1225 = vmatpush3.msra.mxu1 %v496_v46 }
 0x214   :  { %1242 = vmatpush3.msra.mxu0 %v1622_v16  ;;  %1264 = vmatprep.subr.mxu1 %v1516_v0 }
 0x215   :  { %1243 = vmatprep.subr.mxu0 %v1516_v0 }
 0x216   :  { %1244 = vmatpush3.msra.mxu0 %v1644_v18 }
 0x217   :  { %1245 = vmatprep.subr.mxu0 %v1516_v0 }
 0x218   :  { %1246 = vmatpush3.msra.mxu0 %v1649_v19 }
 0x219   :  { %1247 = vmatprep.subr.mxu0 %v1516_v0 }
 0x21a   :  { %1248 = vmatpush3.msra.mxu0 %v1655_v20 }
 0x21b   :  { %1249 = vmatprep.subr.mxu0 %v1516_v0 }
 0x21c   :  { %1250 = vmatpush3.msra.mxu0 %v1661_v21 }
 0x21d   :  { %1251 = vmatprep.subr.mxu0 %v1516_v0 }
 0x21e   :  { %1252 = vmatpush3.msra.mxu0 %v1667_v22 }
 0x21f   :  { %1253 = vmatprep.subr.mxu0 %v1516_v0 }
 0x220   :  { %1254 = vmatpush3.msra.mxu0 %v1673_v23 }
 0x221   :  { %1255 = vmatprep.subr.mxu0 %v1516_v0 }
 0x222   :  { %1256 = vmatpush3.msra.mxu0 %v1677_v24 }
 0x223   :  { %1257 = vmatprep.subr.mxu0 %v1516_v0 }
 0x224   :  { %1258 = vmatpush3.msra.mxu0 %v1681_v25 }
 0x225   :  { %1259 = vmatprep.subr.mxu0 %v1516_v0 }
 0x226   :  { %1260 = vmatpush3.msra.mxu0 %v1688_v26 }
 0x2c7   :  { %v432_v47 = vpop.f32.mrf.mxu0 }
 0x2c8   :  { %v436_v48 = vmul.f32 0.0625, %v432_v47 }
 0x2c9   :  { %v1193_v49 = vpop.f32.mrf.mxu0 }
 0x2ca   :  { %v437_v51 = vadd.f32 1e-05, %v436_v48 }
 0x2cc   :  { %1346 = vrsqrt.f32 %v437_v51 }
 0x2d9   :  { %v1347_v52 = vpop.eup %1346 }
 0x2da   :  { %v446_v53 = vrot.slane %v1347_v52, %v1702_v50 }
 0x2dc   :  { %v447_v54 = vcombine.high %v446_v53, %v446_v53  ;;  %v454_v56 = vrot.slane %v446_v53, %v1702_v50 }
 0x2de   :  { %v461_v57 = vrot.slane %v447_v54, %v1702_v50  ;;  %v465_v58 = vrot.slane %v454_v56, %v1705_v55 }
 0x2e0   :  { %v469_v60 = vrot.slane %v461_v57, %v1705_v55  ;;  %v472_v63 = vmul.f32 %v465_v58, %v1711_v61 }
 0x2e2   :  { %v473_v2 = vmul.f32 %v469_v60, %v1713_v62  ;;  %v478_v3 = vmul.f32 %v985_v59, %v472_v63  ;;  %v879_v60 = vld [vmem:[#allocation10 + $0x78] sm:$0xff]  ;;  %v878_v63 = vld [vmem:[#allocation10 + $0x70] sm:$0xff] }
 0x2e3   :  { %1299 = vmatprep.subr.mxu0 %v879_v60 }
 0x2e4   :  { %v479_v4 = vmul.f32 %v985_v59, %v473_v2  ;;  %v484_v7 = vadd.f32 %v986_v1, %v478_v3  ;;  %v876_v2 = vld [vmem:[#allocation10 + $0x60] sm:$0xff]  ;;  %v875_v3 = vld [vmem:[#allocation10 + $0x58] sm:$0xff] }
 0x2e6   :  { %v485_v9 = vadd.f32 %v986_v1, %v479_v4  ;;  %v488_v11 = vmul.f32 0.70710677, %v484_v7  ;;  %v486_v17 = vmul.f32 0.5, %v484_v7  ;;  %v877_v1 = vld [vmem:[#allocation10 + $0x68] sm:$0xff]  ;;  %v874_v4 = vld [vmem:[#allocation10 + $0x50] sm:$0xff] }
 0x2e7   :  { %v873_v7 = vld [vmem:[#allocation10 + $0x48] sm:$0xff] }
 0x2e8   :  { %v489_v13 = vmul.f32 0.70710677, %v485_v9  ;;  %1348 = verf.f32 %v488_v11  ;;  %v487_v29 = vmul.f32 0.5, %v485_v9  ;;  %v872_v9 = vld [vmem:[#allocation10 + $0x40] sm:$0xff]  ;;  %v871_v11 = vld [vmem:[#allocation10 + $0x38] sm:$0xff] }
 0x2ea   :  { %1350 = verf.f32 %v489_v13  ;;  %v870_v13 = vld [vmem:[#allocation10 + $0x30] sm:$0xff] }
 0x2f5   :  { %v1349_v15 = vpop.eup %1348 }
 0x2f6   :  { %v492_v27 = vadd.f32 1.0, %v1349_v15  ;;  %v869_v15 = vld [vmem:[#allocation10 + $0x28] sm:$0xff] }
 0x2f7   :  { %v1351_v28 = vpop.eup %1350 }
 0x2f8   :  { %v494_v30 = vmul.f32 %v492_v27, %v486_v17  ;;  %v493_v31 = vadd.f32 1.0, %v1351_v28  ;;  %v868_v17 = vld [vmem:[#allocation10 + $0x20] sm:$0xff]  ;;  %v867_v27 = vld [vmem:[#allocation10 + $0x18] sm:$0xff]  ;;  %v866_v28 = vld [vmem:[#allocation10 + $0x10] sm:$0xff] }
 0x2fa   :  { %1226 = vmatprep.mubr.f32.mxu1 %v494_v30  ;;  %v495_v61 = vmul.f32 %v493_v31, %v487_v29  ;;  %v865_v30 = vld [vmem:[#allocation10 + $0x8] sm:$0xff]  ;;  %v864_v29 = vld [vmem:[#allocation10] sm:$0xff] }
 0x2fc   :  { %1227 = vmatmul.mubr.f32.vlgmr.msra.gmra.mxu1 %v495_v61 }
 0x2fd   :  { %1265 = vmatpush3.msra.mxu1 %v1600_v5  ;;  %1296 = vmatprep.mubr.msk.f32.mxu1 %vm1517_vm1, %v1516_v0  ;;  %v987_v5 = vld [vmem:[%s1838_s4] ss:$0 sm:$0xff] }
 0x2fe   :  { %1266 = vmatprep.subr.mxu1 %v1516_v0 }
 0x2ff   :  { %1267 = vmatpush3.msra.mxu1 %v1602_v6 }
 0x300   :  { %1268 = vmatprep.subr.mxu1 %v1516_v0 }
 0x301   :  { %1269 = vmatpush3.msra.mxu1 %v1606_v8 }
 0x302   :  { %1270 = vmatprep.subr.mxu1 %v1516_v0 }
 0x303   :  { %1271 = vmatpush3.msra.mxu1 %v1610_v10 }
 0x304   :  { %1272 = vmatprep.subr.mxu1 %v1516_v0 }
 0x305   :  { %1273 = vmatpush3.msra.mxu1 %v1614_v12 }
 0x306   :  { %1274 = vmatprep.subr.mxu1 %v1516_v0 }
 0x307   :  { %1275 = vmatpush3.msra.mxu1 %v1618_v14 }
 0x308   :  { %1276 = vmatprep.subr.mxu1 %v1516_v0 }
 0x309   :  { %1277 = vmatpush3.msra.mxu1 %v1622_v16 }
 0x30a   :  { %1278 = vmatprep.subr.mxu1 %v1516_v0 }
 0x30b   :  { %1279 = vmatpush3.msra.mxu1 %v1644_v18 }
 0x30c   :  { %1280 = vmatprep.subr.mxu1 %v1516_v0 }
 0x30d   :  { %1281 = vmatpush3.msra.mxu1 %v1649_v19 }
 0x30e   :  { %1282 = vmatprep.subr.mxu1 %v1516_v0 }
 0x30f   :  { %1283 = vmatpush3.msra.mxu1 %v1655_v20 }
 0x310   :  { %1284 = vmatprep.subr.mxu1 %v1516_v0 }
 0x311   :  { %1285 = vmatpush3.msra.mxu1 %v1661_v21 }
 0x312   :  { %1286 = vmatprep.subr.mxu1 %v1516_v0 }
 0x313   :  { %1287 = vmatpush3.msra.mxu1 %v1667_v22 }
 0x314   :  { %1288 = vmatprep.subr.mxu1 %v1516_v0 }
 0x315   :  { %1289 = vmatpush3.msra.mxu1 %v1673_v23 }
 0x316   :  { %1290 = vmatprep.subr.mxu1 %v1516_v0 }
 0x317   :  { %1291 = vmatpush3.msra.mxu1 %v1677_v24 }
 0x318   :  { %1292 = vmatprep.subr.mxu1 %v1516_v0 }
 0x319   :  { %1293 = vmatpush3.msra.mxu1 %v1681_v25 }
 0x31a   :  { %1294 = vmatprep.subr.mxu1 %v1516_v0 }
 0x31b   :  { %1295 = vmatpush3.msra.mxu1 %v1688_v26 }
 0x3bc   :  { %v1228_v6 = vpop.f32.mrf.mxu1 }
 0x3bd   :  { %v589_v8 = vadd.f32 %v1228_v6, %v987_v5 }
 0x3be   :  { %v583_v10 = vpop.f32.mrf.mxu1 }
 0x3bf   :  { %v600_v12 = vrot.slane %v589_v8, 4  ;;  %v584_v14 = vadd.f32 %v987_v5, %v583_v10 }
 0x3c1   :  { %v601_v16 = vadd.f32 %v600_v12, %v589_v8  ;;  %v594_v18 = vrot.slane %v584_v14, 4 }
 0x3c3   :  { %v602_v19 = vrot.slane %v601_v16, 2  ;;  %v595_v20 = vadd.f32 %v594_v18, %v584_v14 }
 0x3c5   :  { %v603_v21 = vadd.f32 %v602_v19, %v601_v16  ;;  %v596_v22 = vrot.slane %v595_v20, 2  ;;  %v988_v19 = vld [vmem:[%s1838_s4 + $0x1] ss:$0 sm:$0xff] }
 0x3c7   :  { %v604_v23 = vrot.slane %v603_v21, 1  ;;  %v597_v24 = vadd.f32 %v596_v22, %v595_v20  ;;  %v989_v22 = vld [vmem:[%s1838_s4 + $0x2] ss:$0 sm:$0xff] }
 0x3c9   :  { %v598_v0 = vrot.slane %v597_v24, 1  ;;  %v605_v26 = vadd.f32 %v604_v23, %v603_v21 }
 0x3cb   :  { %v599_v25 = vadd.f32 %v598_v0, %v597_v24 }
 0x3cd   :  { %v608_v62 = vsel %vm239_vm2, %v605_v26, %v599_v25 }
 0x3ce   :  { %1262 = vmatmul.mubr.f32.vlgmr.msra.gmra.mxu0 %v608_v62 }
 0x3cf   :  { %1300 = vmatpush3.msra.mxu0 %v879_v60 }
 0x3d0   :  { %1301 = vmatprep.subr.mxu0 %v878_v63 }
 0x3d1   :  { %1302 = vmatpush3.msra.mxu0 %v878_v63 }
 0x3d2   :  { %1303 = vmatprep.subr.mxu0 %v877_v1 }
 0x3d3   :  { %1304 = vmatpush3.msra.mxu0 %v877_v1 }
 0x3d4   :  { %1305 = vmatprep.subr.mxu0 %v876_v2 }
 0x3d5   :  { %1306 = vmatpush3.msra.mxu0 %v876_v2 }
 0x3d6   :  { %1307 = vmatprep.subr.mxu0 %v875_v3 }
 0x3d7   :  { %1308 = vmatpush3.msra.mxu0 %v875_v3 }
 0x3d8   :  { %1309 = vmatprep.subr.mxu0 %v874_v4 }
 0x3d9   :  { %1310 = vmatpush3.msra.mxu0 %v874_v4 }
 0x3da   :  { %1311 = vmatprep.subr.mxu0 %v873_v7 }
 0x3db   :  { %1312 = vmatpush3.msra.mxu0 %v873_v7 }
 0x3dc   :  { %1313 = vmatprep.subr.mxu0 %v872_v9 }
 0x3dd   :  { %1314 = vmatpush3.msra.mxu0 %v872_v9 }
 0x3de   :  { %1315 = vmatprep.subr.mxu0 %v871_v11 }
 0x3df   :  { %1316 = vmatpush3.msra.mxu0 %v871_v11 }
 0x3e0   :  { %1317 = vmatprep.subr.mxu0 %v870_v13 }
 0x3e1   :  { %1318 = vmatpush3.msra.mxu0 %v870_v13 }
 0x3e2   :  { %1319 = vmatprep.subr.mxu0 %v869_v15 }
 0x3e3   :  { %1320 = vmatpush3.msra.mxu0 %v869_v15 }
 0x3e4   :  { %1321 = vmatprep.subr.mxu0 %v868_v17 }
 0x3e5   :  { %1322 = vmatpush3.msra.mxu0 %v868_v17 }
 0x3e6   :  { %1323 = vmatprep.subr.mxu0 %v867_v27 }
 0x3e7   :  { %1324 = vmatpush3.msra.mxu0 %v867_v27 }
 0x3e8   :  { %1325 = vmatprep.subr.mxu0 %v866_v28 }
 0x3e9   :  { %1326 = vmatpush3.msra.mxu0 %v866_v28 }
 0x3ea   :  { %1327 = vmatprep.subr.mxu0 %v865_v30 }
 0x3eb   :  { %1328 = vmatpush3.msra.mxu0 %v865_v30 }
 0x3ec   :  { %1329 = vmatprep.subr.mxu0 %v864_v29 }
 0x3ed   :  { %1330 = vmatpush3.msra.mxu0 %v864_v29 }
 0x48e   :  { %v676_v32 = vpop.f32.mrf.mxu0 }
 0x48f   :  { %v680_v33 = vmul.f32 0.0625, %v676_v32 }
 0x490   :  { %v1263_v34 = vpop.f32.mrf.mxu0 }
 0x491   :  { %v688_v35 = vrot.slane %v680_v33, %v1702_v50 }
 0x493   :  { %v689_v36 = vcombine.high %v688_v35, %v688_v35  ;;  %v696_v37 = vrot.slane %v688_v35, %v1702_v50 }
 0x495   :  { %v703_v38 = vrot.slane %v689_v36, %v1702_v50  ;;  %v707_v39 = vrot.slane %v696_v37, %v1705_v55 }
 0x497   :  { %v711_v40 = vrot.slane %v703_v38, %v1705_v55  ;;  %v1803_v41 = vsub.f32 %v584_v14, %v707_v39  ;;  %v990_v39 = vld [vmem:[%s1840_s6] ss:$0 sm:$0xff] }
 0x499   :  { %v1805_v42 = vsub.f32 %v589_v8, %v711_v40  ;;  %v716_v43 = vmul.f32 %v1803_v41, %v1803_v41 }
 0x49b   :  { %v717_v44 = vmul.f32 %v1805_v42, %v1805_v42  ;;  %v718_v45 = vrot.slane %v716_v43, 4 }
 0x49d   :  { %v719_v46 = vadd.f32 %v718_v45, %v716_v43  ;;  %v724_v47 = vrot.slane %v717_v44, 4 }
 0x49f   :  { %v720_v48 = vrot.slane %v719_v46, 2  ;;  %v725_v49 = vadd.f32 %v724_v47, %v717_v44 }
 0x4a1   :  { %v721_v51 = vadd.f32 %v720_v48, %v719_v46  ;;  %v726_v52 = vrot.slane %v725_v49, 2 }
 0x4a3   :  { %v722_v53 = vrot.slane %v721_v51, 1  ;;  %v727_v54 = vadd.f32 %v726_v52, %v725_v49 }
 0x4a5   :  { %v728_v56 = vrot.slane %v727_v54, 1  ;;  %v723_v57 = vadd.f32 %v722_v53, %v721_v51 }
 0x4a7   :  { %v729_v58 = vadd.f32 %v728_v56, %v727_v54 }
 0x4a9   :  { %v732_v59 = vsel %vm239_vm2, %v729_v58, %v723_v57 }
 0x4aa   :  { %1297 = vmatmul.mubr.f32.vlgmr.msra.gmra.mxu1 %v732_v59 }
 0x56a   :  { %v800_v31 = vpop.f32.mrf.mxu1 }
 0x56b   :  { %v804_v61 = vmul.f32 0.0625, %v800_v31 }
 0x56c   :  { %v1298_v5 = vpop.f32.mrf.mxu1 }
 0x56d   :  { %v805_v6 = vadd.f32 1e-05, %v804_v61 }
 0x56f   :  { %1352 = vrsqrt.f32 %v805_v6 }
 0x57c   :  { %v1353_v8 = vpop.eup %1352 }
 0x57d   :  { %v814_v10 = vrot.slane %v1353_v8, %v1702_v50 }
 0x57f   :  { %v815_v12 = vcombine.high %v814_v10, %v814_v10  ;;  %v822_v14 = vrot.slane %v814_v10, %v1702_v50 }
 0x581   :  { %v829_v16 = vrot.slane %v815_v12, %v1702_v50  ;;  %v833_v18 = vrot.slane %v822_v14, %v1705_v55 }
 0x583   :  { %v837_v20 = vrot.slane %v829_v16, %v1705_v55  ;;  %v840_v21 = vmul.f32 %v833_v18, %v1803_v41 }
 0x585   :  { %v841_v23 = vmul.f32 %v837_v20, %v1805_v42  ;;  %v846_v24 = vmul.f32 %v988_v19, %v840_v21 }
 0x587   :  { %v847_v0 = vmul.f32 %v988_v19, %v841_v23  ;;  %v852_v25 = vadd.f32 %v989_v22, %v846_v24 }
 0x589   :  { %v853_v50 = vadd.f32 %v989_v22, %v847_v0  ;;  %v856_v26 = vmul.f32 0.70710677, %v852_v25  ;;  %v854_v33 = vmul.f32 0.5, %v852_v25 }
 0x58b   :  { %v857_v62 = vmul.f32 0.70710677, %v853_v50  ;;  %1354 = verf.f32 %v856_v26  ;;  %v855_v36 = vmul.f32 0.5, %v853_v50 }
 0x58d   :  { %1356 = verf.f32 %v857_v62 }
 0x598   :  { %v1355_v32 = vpop.eup %1354 }
 0x599   :  { %v860_v34 = vadd.f32 1.0, %v1355_v32 }
 0x59a   :  { %v1357_v55 = vpop.eup %1356 }
 0x59b   :  { %v862_v35 = vmul.f32 %v860_v34, %v854_v33  ;;  %v861_v37 = vadd.f32 1.0, %v1357_v55 }
 0x59d   :  { %1331 = vmatprep.mubr.f32.mxu0 %v862_v35  ;;  %v863_v38 = vmul.f32 %v861_v37, %v855_v36 }
 0x59f   :  { %1332 = vmatmul.mubr.f32.vlgmr.msra.gmra.mxu0 %v863_v38 }
 0x65f   :  { %v1333_v40 = vpop.f32.mrf.mxu0 }
 0x660   :  { %v957_v41 = vadd.f32 %v1333_v40, %v990_v39 }
 0x661   :  { %v951_v42 = vpop.f32.mrf.mxu0 }
 0x662   :  { %961 = vst [vmem:[#allocation13 + $0x8] sm:$0xff] %v957_v41  ;;  %v952_v43 = vadd.f32 %v990_v39, %v951_v42 }
 0x664   :  { %960 = vst [vmem:[#allocation13] sm:$0xff] %v952_v43 }
 0x665   :  { %1489 = shalt.err (!%p1486_p6)
}
 0x666   :  { %973 = dma.vmem_to_hbm [thread:$0]  %s968_s19, 256, %s1842_s8, [#allocation4], %s1510_s10, %s1510_s10, %s1511_s11  }
 0x667   :  { %1506 = dma.done.wait [#allocation4], 256  }
 0x668   :  { %1507 = vsyncadd [#allocation4], 4294967040 }
 0x669   :  { %977 = vsyncpa [#allocation3], 1 }
 0x66a   :  { %978 = vsyncpa [#allocation6], 1 }
 0x66b   :  { %979 = vsyncpa [#allocation9], 1 }
 0x66c   :  { %980 = vsyncpa [#allocation12], 1 }
 0x66d   :  { %981 = vsyncpa [#allocation4], 1 }

</bundles_post_ra>
